<compile_context>
chip_gen: v5e
topology: v5e:2x2
jax: 0.10.0
libtpu: 0.0.40
codegen_flags: <defaults>
</compile_context>

<pallas_src>
import jax
import jax.numpy as jnp
import numpy as np
from jax import lax
from jax.experimental import pallas as pl
from jax.experimental.pallas import tpu as pltpu

HIDDEN = 6
BN_EPS = 1e-5


# -------------------------------------------------------------------- kernel
def oli_kernel(x_ref, wbig_ref, wcls_ref, bn_ref, out_ref):
    T, W = x_ref.shape

    wbig = wbig_ref[...]        # (64, 48)   block-diag fused [L0 ; L1] conv weight
    wcls = wcls_ref[...]        # (T, 24*T)  block-diag batched classifier weight
    xv = x_ref[...]             # (T, W)     whole input, loaded once

    # Loop-invariant masks.
    lane16 = lax.broadcasted_iota(jnp.int32, (16, W), 1)
    mf16, ml16 = lane16 == 0, lane16 == W - 1
    laneC = lax.broadcasted_iota(jnp.int32, (8 * T, W), 1)
    mfC, mlC = laneC == 0, laneC == W - 1
    xrow = lax.broadcasted_iota(jnp.int32, (8, W), 0) == 6      # x lives in row 6
    row64 = lax.broadcasted_iota(jnp.int32, (64, W), 0)
    ifo64 = jnp.logical_or(row64 < 24,
                           jnp.logical_and(row64 >= 32, row64 < 56))  # i/f/o rows

    def taps(v, mf, ml):
        # 3-tap stack along sublanes: [v(w-1), v(w), v(w+1)] with zero edge padding.
        right = jnp.where(mf, 0.0, pltpu.roll(v, shift=1, axis=1))
        left = jnp.where(ml, 0.0, pltpu.roll(v, shift=W - 1, axis=1))
        return jnp.concatenate([right, v, left], axis=0)

    def fused_gates(opnd16):
        # opnd16 rows: 0..5 h1, 6 x_next, 7 pad, 8..13 h2, 14..15 pad.
        pre = jnp.dot(wbig, taps(opnd16, mf16, ml16),
                      preferred_element_type=jnp.float32)        # (64, W)
        th = jnp.tanh(pre)                                       # one EUP push
        # i/f/o rows were pre-scaled by 0.5 in the weights: sigmoid(z)=0.5*tanh(z/2)+0.5
        return jnp.where(ifo64, 0.5 * th + 0.5, th)

    def cell(g, c):
        # Gate rows i/f/o/g at 0/8/16/24 (rows 6,7 of each gate zero-padded, so the
        # padded rows of h/c provably stay zero: bias=False, zero init).
        i, f, o, gg = g[0:8], g[8:16], g[16:24], g[24:32]
        c_new = f * c + i * gg
        h_new = o * jnp.tanh(c_new)
        return h_new, c_new

    z8 = jnp.zeros((8, W), jnp.float32)
    zrow = jnp.zeros((1, W), jnp.float32)

    # Prologue: layer-0 gates for t=0 (h1 = h2 = 0); the layer-1 half is discarded.
    g = fused_gates(jnp.concatenate([jnp.where(xrow, xv[0:1, :], z8), z8], axis=0))
    g0 = g[0:32]

    h1 = c1 = h2 = c2 = z8
    h2_steps = []
    for t in range(T):                                           # fully unrolled
        h1, c1 = cell(g0, c1)                                    # layer-0 state at t
        x_next = xv[t + 1:t + 2, :] if t + 1 < T else zrow
        comb = jnp.where(xrow, x_next, h1)                       # [h1_t | x_{t+1}]
        g = fused_gates(jnp.concatenate([comb, h2], axis=0))     # one MXU push
        g0 = g[0:32]                                             # layer-0 gates, t+1
        h2, c2 = cell(g[32:64], c2)                              # layer-1 state at t
        h2_steps.append(h2)

    # Classifier SepConv (6 -> 1, no bias) for ALL timesteps as one batched matmul.
    H2 = jnp.concatenate(h2_steps, axis=0)                       # (8*T, W)
    cls = jnp.dot(wcls, taps(H2, mfC, mlC),
                  preferred_element_type=jnp.float32)            # (T, W)

    # BatchNorm2d (fresh module => training-mode batch stats over all T*W elements of
    # the single channel), two-pass variance, then ReLU; one full-tile store.
    n = jnp.float32(T * W)
    mean = jnp.sum(cls, keepdims=True) / n                       # (1, 1)
    d = cls - mean
    var = jnp.sum(d * d, keepdims=True) / n
    y = d * (lax.rsqrt(var + BN_EPS) * bn_ref[0]) + bn_ref[1]
    out_ref[...] = jnp.maximum(y, 0.0)
    # TODO(synk): BatchNorm running-stat buffer updates (running_mean/var) are not
    # materialized; they do not affect the forward output.


# ---------------------------------------------------------------- host glue
def init_params(key):
    """PyTorch-shaped parameters (OIHW conv weights, bias=False everywhere)."""
    k0, k1, k2 = jax.random.split(key, 3)
    w_l0 = 0.3 * jax.random.normal(k0, (4 * HIDDEN, 1 + HIDDEN, 3, 3), jnp.float32)
    w_l1 = 0.3 * jax.random.normal(k1, (4 * HIDDEN, 2 * HIDDEN, 3, 3), jnp.float32)
    w_cls = 0.3 * jax.random.normal(k2, (1, HIDDEN, 3, 3), jnp.float32)
    bn = jnp.array([1.0, 0.0], jnp.float32)   # BatchNorm2d default gamma, beta
    return w_l0, w_l1, w_cls, bn


def _fuse_weights(w_l0, w_l1, w_cls, T):
    """Build the fused kernel weights.

    H == 1 with padding 1 => only the middle 3x3 kernel row touches real data.
    Shared operand layout (16 sublane rows) for the skewed block-diagonal step:
        rows 0..5 = h1_t, row 6 = x_{t+1}, row 7 = pad, rows 8..13 = h2_{t-1}, 14..15 = pad
    Fused weight column = kw*16 + row; output rows: layer-0 gates 0..31, layer-1 32..63,
    gates i/f/o/g at rows 0/8/16/24 of each 32-block (rows 6,7 of each gate zero).
    i/f/o rows are pre-scaled by 0.5 (sigmoid-via-tanh fold).

    Classifier: operand is taps(concat_t h2_t) of shape (3*8*T, W), column index
    kw*(8*T) + 8*t + c; wc_big row t holds w_cls's middle-row weights on its diagonal block.
    """
    H = HIDDEN
    m0 = w_l0[:, :, 1, :]      # (24, 7, 3)   out, in(x=0, h1=1..6), kw
    m1 = w_l1[:, :, 1, :]      # (24, 12, 3)  out, in(h1=0..5, h2=6..11), kw
    mc = w_cls[:, :, 1, :]     # (1, 6, 3)

    w0g = m0.reshape(4, H, 1 + H, 3)       # (gate, oc, in, kw)
    w1g = m1.reshape(4, H, 2 * H, 3)

    wb = jnp.zeros((2, 4, 8, 3, 16), jnp.float32)   # (layer, gate, oc_pad, kw, row)
    wb = wb.at[0, :, 0:H, :, 6].set(w0g[:, :, 0, :])                                      # x
    wb = wb.at[0, :, 0:H, :, 0:H].set(jnp.transpose(w0g[:, :, 1:1 + H, :], (0, 1, 3, 2)))  # h1
    wb = wb.at[1, :, 0:H, :, 0:H].set(jnp.transpose(w1g[:, :, 0:H, :], (0, 1, 3, 2)))      # h1_new
    wb = wb.at[1, :, 0:H, :, 8:8 + H].set(jnp.transpose(w1g[:, :, H:2 * H, :], (0, 1, 3, 2)))  # h2
    wb = wb.at[:, 0:3].multiply(0.5)       # fold sigmoid prescale into i/f/o gate rows
    w_big = wb.reshape(64, 48)

    mcT = jnp.transpose(mc[0], (1, 0))     # (3, 6)  [kw, channel]
    wcb = jnp.zeros((T, 3, T, 8), jnp.float32)
    for t in range(T):
        wcb = wcb.at[t, :, t, 0:H].set(mcT)
    wc_big = wcb.reshape(T, 3 * 8 * T)
    return w_big, wc_big


@jax.jit
def oli_network_2(weight_avg, w_l0, w_l1, w_cls, bn):
    T, W = weight_avg.shape
    x = weight_avg.astype(jnp.float32)
    w_big, wc_big = _fuse_weights(w_l0, w_l1, w_cls, T)

    vmem = pl.BlockSpec(memory_space=pltpu.MemorySpace.VMEM)
    smem = pl.BlockSpec(memory_space=pltpu.MemorySpace.SMEM)

    return pl.pallas_call(
        oli_kernel,
        out_shape=jax.ShapeDtypeStruct((T, W), jnp.float32),
        in_specs=[vmem, vmem, vmem, smem],
        out_specs=vmem,
    )(x, w_big, wc_big, bn)


# --------------------------------------------------------- pure-JAX reference
def _conv2d_ref(x, w):
    return lax.conv_general_dilated(
        x, w, window_strides=(1, 1), padding=((1, 1), (1, 1)),
        dimension_numbers=('NCHW', 'OIHW', 'NCHW'))


def oli_network_2_ref(weight_avg, w_l0, w_l1, w_cls, bn):
    T, W = weight_avg.shape
    x = weight_avg.astype(jnp.float32).reshape(T, 1, 1, 1, W)  # (t, b, c, h, w)
    x = jnp.transpose(x, (1, 0, 2, 3, 4))                      # (b=1, t, c, h, w)

    def run_layer(seq_in, w):
        h = jnp.zeros((1, HIDDEN, 1, W), jnp.float32)
        c = jnp.zeros((1, HIDDEN, 1, W), jnp.float32)
        outs = []
        for t in range(seq_in.shape[1]):
            comb = jnp.concatenate([seq_in[:, t], h], axis=1)
            cc = _conv2d_ref(comb, w)
            ci, cf, co, cg = jnp.split(cc, 4, axis=1)
            i = jax.nn.sigmoid(ci); f = jax.nn.sigmoid(cf)
            o = jax.nn.sigmoid(co); g = jnp.tanh(cg)
            c = f * c + i * g
            h = o * jnp.tanh(c)
            outs.append(h)
        return jnp.stack(outs, axis=1)                         # (1, T, 6, 1, W)

    l0 = run_layer(x, w_l0)
    l1 = run_layer(l0, w_l1)
    sel = l1[0]                                                # (T, 6, 1, W)
    conv = _conv2d_ref(sel, w_cls)                             # (T, 1, 1, W)
    mean = jnp.mean(conv)
    var = jnp.mean((conv - mean) ** 2)
    y = (conv - mean) * lax.rsqrt(var + BN_EPS) * bn[0] + bn[1]
    y = jnp.maximum(y, 0.0)
    return y.reshape(T, W)


if __name__ == "__main__":
    key = jax.random.PRNGKey(0)
    kx, kp = jax.random.split(key)
    T, W = 8, 128
    weight_avg = jax.random.normal(kx, (T, W), jnp.float32)
    w_l0, w_l1, w_cls, bn = init_params(kp)

    out = oli_network_2(weight_avg, w_l0, w_l1, w_cls, bn)
    out = jax.block_until_ready(out)

    ref = oli_network_2_ref(weight_avg, w_l0, w_l1, w_cls, bn)
    out_np, ref_np = np.asarray(out), np.asarray(ref)
    if not np.allclose(out_np, ref_np, atol=5e-3, rtol=5e-3):
        raise AssertionError(
            f"kernel/reference mismatch, max abs err = {np.max(np.abs(out_np - ref_np))}")
    print("KERNEL_OK")
</pallas_src>

<mosaic_0001>
module attributes {stable_mosaic.version = 11 : i64} {
  func.func @oli_kernel(%arg0: memref<8x128xf32, #tpu.memory_space<vmem>>, %arg1: memref<64x48xf32, #tpu.memory_space<vmem>>, %arg2: memref<8x192xf32, #tpu.memory_space<vmem>>, %arg3: memref<2xf32, #tpu.memory_space<smem>>, %arg4: memref<8x128xf32, #tpu.memory_space<vmem>>) attributes {dimension_semantics = [], scalar_prefetch = 0 : i64, scratch_operands = 0 : i64, tpu.core_type = #tpu.core_type<tc>} {
    %c0 = arith.constant 0 : index
    %c0_0 = arith.constant 0 : index
    %0 = vector.load %arg1[%c0, %c0_0] : memref<64x48xf32, #tpu.memory_space<vmem>>, vector<64x48xf32>
    %c0_1 = arith.constant 0 : index
    %c0_2 = arith.constant 0 : index
    %1 = vector.load %arg2[%c0_1, %c0_2] : memref<8x192xf32, #tpu.memory_space<vmem>>, vector<8x192xf32>
    %c0_3 = arith.constant 0 : index
    %c0_4 = arith.constant 0 : index
    %2 = vector.load %arg0[%c0_3, %c0_4] : memref<8x128xf32, #tpu.memory_space<vmem>>, vector<8x128xf32>
    %3 = tpu.iota {dimensions = array<i32: 1>} : vector<16x128xi32>
    %c0_i32 = arith.constant 0 : i32
    %4 = vector.broadcast %c0_i32 : i32 to vector<16x128xi32>
    %5 = arith.cmpi eq, %3, %4 : vector<16x128xi32>
    %c127_i32 = arith.constant 127 : i32
    %6 = vector.broadcast %c127_i32 : i32 to vector<16x128xi32>
    %7 = arith.cmpi eq, %3, %6 : vector<16x128xi32>
    %8 = tpu.iota {dimensions = array<i32: 1>} : vector<64x128xi32>
    %c0_i32_5 = arith.constant 0 : i32
    %9 = vector.broadcast %c0_i32_5 : i32 to vector<64x128xi32>
    %10 = arith.cmpi eq, %8, %9 : vector<64x128xi32>
    %c127_i32_6 = arith.constant 127 : i32
    %11 = vector.broadcast %c127_i32_6 : i32 to vector<64x128xi32>
    %12 = arith.cmpi eq, %8, %11 : vector<64x128xi32>
    %13 = tpu.iota {dimensions = array<i32: 0>} : vector<8x128xi32>
    %c6_i32 = arith.constant 6 : i32
    %14 = vector.broadcast %c6_i32 : i32 to vector<8x128xi32>
    %15 = arith.cmpi eq, %13, %14 : vector<8x128xi32>
    %16 = tpu.iota {dimensions = array<i32: 0>} : vector<64x128xi32>
    %c24_i32 = arith.constant 24 : i32
    %17 = vector.broadcast %c24_i32 : i32 to vector<64x128xi32>
    %18 = arith.cmpi slt, %16, %17 : vector<64x128xi32>
    %c32_i32 = arith.constant 32 : i32
    %19 = vector.broadcast %c32_i32 : i32 to vector<64x128xi32>
    %20 = arith.cmpi sge, %16, %19 : vector<64x128xi32>
    %c56_i32 = arith.constant 56 : i32
    %21 = vector.broadcast %c56_i32 : i32 to vector<64x128xi32>
    %22 = arith.cmpi slt, %16, %21 : vector<64x128xi32>
    %23 = arith.andi %20, %22 : vector<64x128xi1>
    %24 = arith.ori %18, %23 : vector<64x128xi1>
    %cst = arith.constant 0.000000e+00 : f32
    %25 = vector.broadcast %cst : f32 to vector<8x128xf32>
    %cst_7 = arith.constant 0.000000e+00 : f32
    %26 = vector.broadcast %cst_7 : f32 to vector<1x128xf32>
    %27 = vector.extract_strided_slice %2 {offsets = [0, 0], sizes = [1, 128], strides = [1, 1]} : vector<8x128xf32> to vector<1x128xf32>
    %28 = vector.shape_cast %27 : vector<1x128xf32> to vector<1x128xf32>
    %29 = vector.broadcast %28 : vector<1x128xf32> to vector<8x128xf32>
    %30 = arith.select %15, %29, %25 : vector<8x128xi1>, vector<8x128xf32>
    %31 = tpu.concatenate %30, %25 in 0 : vector<8x128xf32>, vector<8x128xf32> -> vector<16x128xf32>
    %c1_i32 = arith.constant 1 : i32
    %32 = tpu.dynamic_rotate %31 by %c1_i32 dim 1 : vector<16x128xf32>, i32 -> vector<16x128xf32>
    %cst_8 = arith.constant 0.000000e+00 : f32
    %33 = vector.broadcast %cst_8 : f32 to vector<16x128xf32>
    %34 = arith.select %5, %33, %32 : vector<16x128xi1>, vector<16x128xf32>
    %c127_i32_9 = arith.constant 127 : i32
    %35 = tpu.dynamic_rotate %31 by %c127_i32_9 dim 1 : vector<16x128xf32>, i32 -> vector<16x128xf32>
    %cst_10 = arith.constant 0.000000e+00 : f32
    %36 = vector.broadcast %cst_10 : f32 to vector<16x128xf32>
    %37 = arith.select %7, %36, %35 : vector<16x128xi1>, vector<16x128xf32>
    %38 = tpu.concatenate %34, %31, %37 in 0 : vector<16x128xf32>, vector<16x128xf32>, vector<16x128xf32> -> vector<48x128xf32>
    %cst_11 = arith.constant dense<0.000000e+00> : vector<64x128xf32>
    %39 = tpu.matmul %0, %38, %cst_11 {dimension_numbers = #tpu.dot_dimension_numbers<[1], [0], [0], [1], [0, 0, 1, 1], [], []>} : vector<64x48xf32>, vector<48x128xf32>, vector<64x128xf32> -> vector<64x128xf32>
    %40 = math.tanh %39 : vector<64x128xf32>
    %cst_12 = arith.constant 5.000000e-01 : f32
    %41 = vector.broadcast %cst_12 : f32 to vector<64x128xf32>
    %42 = arith.mulf %41, %40 : vector<64x128xf32>
    %cst_13 = arith.constant 5.000000e-01 : f32
    %43 = vector.broadcast %cst_13 : f32 to vector<64x128xf32>
    %44 = arith.addf %42, %43 : vector<64x128xf32>
    %45 = arith.select %24, %44, %40 : vector<64x128xi1>, vector<64x128xf32>
    %46 = vector.extract_strided_slice %45 {offsets = [0, 0], sizes = [32, 128], strides = [1, 1]} : vector<64x128xf32> to vector<32x128xf32>
    %47 = vector.extract_strided_slice %46 {offsets = [0, 0], sizes = [8, 128], strides = [1, 1]} : vector<32x128xf32> to vector<8x128xf32>
    %48 = vector.extract_strided_slice %46 {offsets = [8, 0], sizes = [8, 128], strides = [1, 1]} : vector<32x128xf32> to vector<8x128xf32>
    %49 = vector.extract_strided_slice %46 {offsets = [16, 0], sizes = [8, 128], strides = [1, 1]} : vector<32x128xf32> to vector<8x128xf32>
    %50 = vector.extract_strided_slice %46 {offsets = [24, 0], sizes = [8, 128], strides = [1, 1]} : vector<32x128xf32> to vector<8x128xf32>
    %51 = arith.mulf %48, %25 : vector<8x128xf32>
    %52 = arith.mulf %47, %50 : vector<8x128xf32>
    %53 = arith.addf %51, %52 : vector<8x128xf32>
    %54 = math.tanh %53 : vector<8x128xf32>
    %55 = arith.mulf %49, %54 : vector<8x128xf32>
    %56 = vector.extract_strided_slice %2 {offsets = [1, 0], sizes = [1, 128], strides = [1, 1]} : vector<8x128xf32> to vector<1x128xf32>
    %57 = vector.shape_cast %56 : vector<1x128xf32> to vector<1x128xf32>
    %58 = vector.broadcast %57 : vector<1x128xf32> to vector<8x128xf32>
    %59 = arith.select %15, %58, %55 : vector<8x128xi1>, vector<8x128xf32>
    %60 = tpu.concatenate %59, %25 in 0 : vector<8x128xf32>, vector<8x128xf32> -> vector<16x128xf32>
    %c1_i32_14 = arith.constant 1 : i32
    %61 = tpu.dynamic_rotate %60 by %c1_i32_14 dim 1 : vector<16x128xf32>, i32 -> vector<16x128xf32>
    %cst_15 = arith.constant 0.000000e+00 : f32
    %62 = vector.broadcast %cst_15 : f32 to vector<16x128xf32>
    %63 = arith.select %5, %62, %61 : vector<16x128xi1>, vector<16x128xf32>
    %c127_i32_16 = arith.constant 127 : i32
    %64 = tpu.dynamic_rotate %60 by %c127_i32_16 dim 1 : vector<16x128xf32>, i32 -> vector<16x128xf32>
    %cst_17 = arith.constant 0.000000e+00 : f32
    %65 = vector.broadcast %cst_17 : f32 to vector<16x128xf32>
    %66 = arith.select %7, %65, %64 : vector<16x128xi1>, vector<16x128xf32>
    %67 = tpu.concatenate %63, %60, %66 in 0 : vector<16x128xf32>, vector<16x128xf32>, vector<16x128xf32> -> vector<48x128xf32>
    %cst_18 = arith.constant dense<0.000000e+00> : vector<64x128xf32>
    %68 = tpu.matmul %0, %67, %cst_18 {dimension_numbers = #tpu.dot_dimension_numbers<[1], [0], [0], [1], [0, 0, 1, 1], [], []>} : vector<64x48xf32>, vector<48x128xf32>, vector<64x128xf32> -> vector<64x128xf32>
    %69 = math.tanh %68 : vector<64x128xf32>
    %cst_19 = arith.constant 5.000000e-01 : f32
    %70 = vector.broadcast %cst_19 : f32 to vector<64x128xf32>
    %71 = arith.mulf %70, %69 : vector<64x128xf32>
    %cst_20 = arith.constant 5.000000e-01 : f32
    %72 = vector.broadcast %cst_20 : f32 to vector<64x128xf32>
    %73 = arith.addf %71, %72 : vector<64x128xf32>
    %74 = arith.select %24, %73, %69 : vector<64x128xi1>, vector<64x128xf32>
    %75 = vector.extract_strided_slice %74 {offsets = [0, 0], sizes = [32, 128], strides = [1, 1]} : vector<64x128xf32> to vector<32x128xf32>
    %76 = vector.extract_strided_slice %74 {offsets = [32, 0], sizes = [32, 128], strides = [1, 1]} : vector<64x128xf32> to vector<32x128xf32>
    %77 = vector.extract_strided_slice %76 {offsets = [0, 0], sizes = [8, 128], strides = [1, 1]} : vector<32x128xf32> to vector<8x128xf32>
    %78 = vector.extract_strided_slice %76 {offsets = [8, 0], sizes = [8, 128], strides = [1, 1]} : vector<32x128xf32> to vector<8x128xf32>
    %79 = vector.extract_strided_slice %76 {offsets = [16, 0], sizes = [8, 128], strides = [1, 1]} : vector<32x128xf32> to vector<8x128xf32>
    %80 = vector.extract_strided_slice %76 {offsets = [24, 0], sizes = [8, 128], strides = [1, 1]} : vector<32x128xf32> to vector<8x128xf32>
    %81 = arith.mulf %78, %25 : vector<8x128xf32>
    %82 = arith.mulf %77, %80 : vector<8x128xf32>
    %83 = arith.addf %81, %82 : vector<8x128xf32>
    %84 = math.tanh %83 : vector<8x128xf32>
    %85 = arith.mulf %79, %84 : vector<8x128xf32>
    %86 = vector.extract_strided_slice %75 {offsets = [0, 0], sizes = [8, 128], strides = [1, 1]} : vector<32x128xf32> to vector<8x128xf32>
    %87 = vector.extract_strided_slice %75 {offsets = [8, 0], sizes = [8, 128], strides = [1, 1]} : vector<32x128xf32> to vector<8x128xf32>
    %88 = vector.extract_strided_slice %75 {offsets = [16, 0], sizes = [8, 128], strides = [1, 1]} : vector<32x128xf32> to vector<8x128xf32>
    %89 = vector.extract_strided_slice %75 {offsets = [24, 0], sizes = [8, 128], strides = [1, 1]} : vector<32x128xf32> to vector<8x128xf32>
    %90 = arith.mulf %87, %53 : vector<8x128xf32>
    %91 = arith.mulf %86, %89 : vector<8x128xf32>
    %92 = arith.addf %90, %91 : vector<8x128xf32>
    %93 = math.tanh %92 : vector<8x128xf32>
    %94 = arith.mulf %88, %93 : vector<8x128xf32>
    %95 = vector.extract_strided_slice %2 {offsets = [2, 0], sizes = [1, 128], strides = [1, 1]} : vector<8x128xf32> to vector<1x128xf32>
    %96 = vector.shape_cast %95 : vector<1x128xf32> to vector<1x128xf32>
    %97 = vector.broadcast %96 : vector<1x128xf32> to vector<8x128xf32>
    %98 = arith.select %15, %97, %94 : vector<8x128xi1>, vector<8x128xf32>
    %99 = tpu.concatenate %98, %85 in 0 : vector<8x128xf32>, vector<8x128xf32> -> vector<16x128xf32>
    %c1_i32_21 = arith.constant 1 : i32
    %100 = tpu.dynamic_rotate %99 by %c1_i32_21 dim 1 : vector<16x128xf32>, i32 -> vector<16x128xf32>
    %cst_22 = arith.constant 0.000000e+00 : f32
    %101 = vector.broadcast %cst_22 : f32 to vector<16x128xf32>
    %102 = arith.select %5, %101, %100 : vector<16x128xi1>, vector<16x128xf32>
    %c127_i32_23 = arith.constant 127 : i32
    %103 = tpu.dynamic_rotate %99 by %c127_i32_23 dim 1 : vector<16x128xf32>, i32 -> vector<16x128xf32>
    %cst_24 = arith.constant 0.000000e+00 : f32
    %104 = vector.broadcast %cst_24 : f32 to vector<16x128xf32>
    %105 = arith.select %7, %104, %103 : vector<16x128xi1>, vector<16x128xf32>
    %106 = tpu.concatenate %102, %99, %105 in 0 : vector<16x128xf32>, vector<16x128xf32>, vector<16x128xf32> -> vector<48x128xf32>
    %cst_25 = arith.constant dense<0.000000e+00> : vector<64x128xf32>
    %107 = tpu.matmul %0, %106, %cst_25 {dimension_numbers = #tpu.dot_dimension_numbers<[1], [0], [0], [1], [0, 0, 1, 1], [], []>} : vector<64x48xf32>, vector<48x128xf32>, vector<64x128xf32> -> vector<64x128xf32>
    %108 = math.tanh %107 : vector<64x128xf32>
    %cst_26 = arith.constant 5.000000e-01 : f32
    %109 = vector.broadcast %cst_26 : f32 to vector<64x128xf32>
    %110 = arith.mulf %109, %108 : vector<64x128xf32>
    %cst_27 = arith.constant 5.000000e-01 : f32
    %111 = vector.broadcast %cst_27 : f32 to vector<64x128xf32>
    %112 = arith.addf %110, %111 : vector<64x128xf32>
    %113 = arith.select %24, %112, %108 : vector<64x128xi1>, vector<64x128xf32>
    %114 = vector.extract_strided_slice %113 {offsets = [0, 0], sizes = [32, 128], strides = [1, 1]} : vector<64x128xf32> to vector<32x128xf32>
    %115 = vector.extract_strided_slice %113 {offsets = [32, 0], sizes = [32, 128], strides = [1, 1]} : vector<64x128xf32> to vector<32x128xf32>
    %116 = vector.extract_strided_slice %115 {offsets = [0, 0], sizes = [8, 128], strides = [1, 1]} : vector<32x128xf32> to vector<8x128xf32>
    %117 = vector.extract_strided_slice %115 {offsets = [8, 0], sizes = [8, 128], strides = [1, 1]} : vector<32x128xf32> to vector<8x128xf32>
    %118 = vector.extract_strided_slice %115 {offsets = [16, 0], sizes = [8, 128], strides = [1, 1]} : vector<32x128xf32> to vector<8x128xf32>
    %119 = vector.extract_strided_slice %115 {offsets = [24, 0], sizes = [8, 128], strides = [1, 1]} : vector<32x128xf32> to vector<8x128xf32>
    %120 = arith.mulf %117, %83 : vector<8x128xf32>
    %121 = arith.mulf %116, %119 : vector<8x128xf32>
    %122 = arith.addf %120, %121 : vector<8x128xf32>
    %123 = math.tanh %122 : vector<8x128xf32>
    %124 = arith.mulf %118, %123 : vector<8x128xf32>
    %125 = vector.extract_strided_slice %114 {offsets = [0, 0], sizes = [8, 128], strides = [1, 1]} : vector<32x128xf32> to vector<8x128xf32>
    %126 = vector.extract_strided_slice %114 {offsets = [8, 0], sizes = [8, 128], strides = [1, 1]} : vector<32x128xf32> to vector<8x128xf32>
    %127 = vector.extract_strided_slice %114 {offsets = [16, 0], sizes = [8, 128], strides = [1, 1]} : vector<32x128xf32> to vector<8x128xf32>
    %128 = vector.extract_strided_slice %114 {offsets = [24, 0], sizes = [8, 128], strides = [1, 1]} : vector<32x128xf32> to vector<8x128xf32>
    %129 = arith.mulf %126, %92 : vector<8x128xf32>
    %130 = arith.mulf %125, %128 : vector<8x128xf32>
    %131 = arith.addf %129, %130 : vector<8x128xf32>
    %132 = math.tanh %131 : vector<8x128xf32>
    %133 = arith.mulf %127, %132 : vector<8x128xf32>
    %134 = vector.extract_strided_slice %2 {offsets = [3, 0], sizes = [1, 128], strides = [1, 1]} : vector<8x128xf32> to vector<1x128xf32>
    %135 = vector.shape_cast %134 : vector<1x128xf32> to vector<1x128xf32>
    %136 = vector.broadcast %135 : vector<1x128xf32> to vector<8x128xf32>
    %137 = arith.select %15, %136, %133 : vector<8x128xi1>, vector<8x128xf32>
    %138 = tpu.concatenate %137, %124 in 0 : vector<8x128xf32>, vector<8x128xf32> -> vector<16x128xf32>
    %c1_i32_28 = arith.constant 1 : i32
    %139 = tpu.dynamic_rotate %138 by %c1_i32_28 dim 1 : vector<16x128xf32>, i32 -> vector<16x128xf32>
    %cst_29 = arith.constant 0.000000e+00 : f32
    %140 = vector.broadcast %cst_29 : f32 to vector<16x128xf32>
    %141 = arith.select %5, %140, %139 : vector<16x128xi1>, vector<16x128xf32>
    %c127_i32_30 = arith.constant 127 : i32
    %142 = tpu.dynamic_rotate %138 by %c127_i32_30 dim 1 : vector<16x128xf32>, i32 -> vector<16x128xf32>
    %cst_31 = arith.constant 0.000000e+00 : f32
    %143 = vector.broadcast %cst_31 : f32 to vector<16x128xf32>
    %144 = arith.select %7, %143, %142 : vector<16x128xi1>, vector<16x128xf32>
    %145 = tpu.concatenate %141, %138, %144 in 0 : vector<16x128xf32>, vector<16x128xf32>, vector<16x128xf32> -> vector<48x128xf32>
    %cst_32 = arith.constant dense<0.000000e+00> : vector<64x128xf32>
    %146 = tpu.matmul %0, %145, %cst_32 {dimension_numbers = #tpu.dot_dimension_numbers<[1], [0], [0], [1], [0, 0, 1, 1], [], []>} : vector<64x48xf32>, vector<48x128xf32>, vector<64x128xf32> -> vector<64x128xf32>
    %147 = math.tanh %146 : vector<64x128xf32>
    %cst_33 = arith.constant 5.000000e-01 : f32
    %148 = vector.broadcast %cst_33 : f32 to vector<64x128xf32>
    %149 = arith.mulf %148, %147 : vector<64x128xf32>
    %cst_34 = arith.constant 5.000000e-01 : f32
    %150 = vector.broadcast %cst_34 : f32 to vector<64x128xf32>
    %151 = arith.addf %149, %150 : vector<64x128xf32>
    %152 = arith.select %24, %151, %147 : vector<64x128xi1>, vector<64x128xf32>
    %153 = vector.extract_strided_slice %152 {offsets = [0, 0], sizes = [32, 128], strides = [1, 1]} : vector<64x128xf32> to vector<32x128xf32>
    %154 = vector.extract_strided_slice %152 {offsets = [32, 0], sizes = [32, 128], strides = [1, 1]} : vector<64x128xf32> to vector<32x128xf32>
    %155 = vector.extract_strided_slice %154 {offsets = [0, 0], sizes = [8, 128], strides = [1, 1]} : vector<32x128xf32> to vector<8x128xf32>
    %156 = vector.extract_strided_slice %154 {offsets = [8, 0], sizes = [8, 128], strides = [1, 1]} : vector<32x128xf32> to vector<8x128xf32>
    %157 = vector.extract_strided_slice %154 {offsets = [16, 0], sizes = [8, 128], strides = [1, 1]} : vector<32x128xf32> to vector<8x128xf32>
    %158 = vector.extract_strided_slice %154 {offsets = [24, 0], sizes = [8, 128], strides = [1, 1]} : vector<32x128xf32> to vector<8x128xf32>
    %159 = arith.mulf %156, %122 : vector<8x128xf32>
    %160 = arith.mulf %155, %158 : vector<8x128xf32>
    %161 = arith.addf %159, %160 : vector<8x128xf32>
    %162 = math.tanh %161 : vector<8x128xf32>
    %163 = arith.mulf %157, %162 : vector<8x128xf32>
    %164 = vector.extract_strided_slice %153 {offsets = [0, 0], sizes = [8, 128], strides = [1, 1]} : vector<32x128xf32> to vector<8x128xf32>
    %165 = vector.extract_strided_slice %153 {offsets = [8, 0], sizes = [8, 128], strides = [1, 1]} : vector<32x128xf32> to vector<8x128xf32>
    %166 = vector.extract_strided_slice %153 {offsets = [16, 0], sizes = [8, 128], strides = [1, 1]} : vector<32x128xf32> to vector<8x128xf32>
    %167 = vector.extract_strided_slice %153 {offsets = [24, 0], sizes = [8, 128], strides = [1, 1]} : vector<32x128xf32> to vector<8x128xf32>
    %168 = arith.mulf %165, %131 : vector<8x128xf32>
    %169 = arith.mulf %164, %167 : vector<8x128xf32>
    %170 = arith.addf %168, %169 : vector<8x128xf32>
    %171 = math.tanh %170 : vector<8x128xf32>
    %172 = arith.mulf %166, %171 : vector<8x128xf32>
    %173 = vector.extract_strided_slice %2 {offsets = [4, 0], sizes = [1, 128], strides = [1, 1]} : vector<8x128xf32> to vector<1x128xf32>
    %174 = vector.shape_cast %173 : vector<1x128xf32> to vector<1x128xf32>
    %175 = vector.broadcast %174 : vector<1x128xf32> to vector<8x128xf32>
    %176 = arith.select %15, %175, %172 : vector<8x128xi1>, vector<8x128xf32>
    %177 = tpu.concatenate %176, %163 in 0 : vector<8x128xf32>, vector<8x128xf32> -> vector<16x128xf32>
    %c1_i32_35 = arith.constant 1 : i32
    %178 = tpu.dynamic_rotate %177 by %c1_i32_35 dim 1 : vector<16x128xf32>, i32 -> vector<16x128xf32>
    %cst_36 = arith.constant 0.000000e+00 : f32
    %179 = vector.broadcast %cst_36 : f32 to vector<16x128xf32>
    %180 = arith.select %5, %179, %178 : vector<16x128xi1>, vector<16x128xf32>
    %c127_i32_37 = arith.constant 127 : i32
    %181 = tpu.dynamic_rotate %177 by %c127_i32_37 dim 1 : vector<16x128xf32>, i32 -> vector<16x128xf32>
    %cst_38 = arith.constant 0.000000e+00 : f32
    %182 = vector.broadcast %cst_38 : f32 to vector<16x128xf32>
    %183 = arith.select %7, %182, %181 : vector<16x128xi1>, vector<16x128xf32>
    %184 = tpu.concatenate %180, %177, %183 in 0 : vector<16x128xf32>, vector<16x128xf32>, vector<16x128xf32> -> vector<48x128xf32>
    %cst_39 = arith.constant dense<0.000000e+00> : vector<64x128xf32>
    %185 = tpu.matmul %0, %184, %cst_39 {dimension_numbers = #tpu.dot_dimension_numbers<[1], [0], [0], [1], [0, 0, 1, 1], [], []>} : vector<64x48xf32>, vector<48x128xf32>, vector<64x128xf32> -> vector<64x128xf32>
    %186 = math.tanh %185 : vector<64x128xf32>
    %cst_40 = arith.constant 5.000000e-01 : f32
    %187 = vector.broadcast %cst_40 : f32 to vector<64x128xf32>
    %188 = arith.mulf %187, %186 : vector<64x128xf32>
    %cst_41 = arith.constant 5.000000e-01 : f32
    %189 = vector.broadcast %cst_41 : f32 to vector<64x128xf32>
    %190 = arith.addf %188, %189 : vector<64x128xf32>
    %191 = arith.select %24, %190, %186 : vector<64x128xi1>, vector<64x128xf32>
    %192 = vector.extract_strided_slice %191 {offsets = [0, 0], sizes = [32, 128], strides = [1, 1]} : vector<64x128xf32> to vector<32x128xf32>
    %193 = vector.extract_strided_slice %191 {offsets = [32, 0], sizes = [32, 128], strides = [1, 1]} : vector<64x128xf32> to vector<32x128xf32>
    %194 = vector.extract_strided_slice %193 {offsets = [0, 0], sizes = [8, 128], strides = [1, 1]} : vector<32x128xf32> to vector<8x128xf32>
    %195 = vector.extract_strided_slice %193 {offsets = [8, 0], sizes = [8, 128], strides = [1, 1]} : vector<32x128xf32> to vector<8x128xf32>
    %196 = vector.extract_strided_slice %193 {offsets = [16, 0], sizes = [8, 128], strides = [1, 1]} : vector<32x128xf32> to vector<8x128xf32>
    %197 = vector.extract_strided_slice %193 {offsets = [24, 0], sizes = [8, 128], strides = [1, 1]} : vector<32x128xf32> to vector<8x128xf32>
    %198 = arith.mulf %195, %161 : vector<8x128xf32>
    %199 = arith.mulf %194, %197 : vector<8x128xf32>
    %200 = arith.addf %198, %199 : vector<8x128xf32>
    %201 = math.tanh %200 : vector<8x128xf32>
    %202 = arith.mulf %196, %201 : vector<8x128xf32>
    %203 = vector.extract_strided_slice %192 {offsets = [0, 0], sizes = [8, 128], strides = [1, 1]} : vector<32x128xf32> to vector<8x128xf32>
    %204 = vector.extract_strided_slice %192 {offsets = [8, 0], sizes = [8, 128], strides = [1, 1]} : vector<32x128xf32> to vector<8x128xf32>
    %205 = vector.extract_strided_slice %192 {offsets = [16, 0], sizes = [8, 128], strides = [1, 1]} : vector<32x128xf32> to vector<8x128xf32>
    %206 = vector.extract_strided_slice %192 {offsets = [24, 0], sizes = [8, 128], strides = [1, 1]} : vector<32x128xf32> to vector<8x128xf32>
    %207 = arith.mulf %204, %170 : vector<8x128xf32>
    %208 = arith.mulf %203, %206 : vector<8x128xf32>
    %209 = arith.addf %207, %208 : vector<8x128xf32>
    %210 = math.tanh %209 : vector<8x128xf32>
    %211 = arith.mulf %205, %210 : vector<8x128xf32>
    %212 = vector.extract_strided_slice %2 {offsets = [5, 0], sizes = [1, 128], strides = [1, 1]} : vector<8x128xf32> to vector<1x128xf32>
    %213 = vector.shape_cast %212 : vector<1x128xf32> to vector<1x128xf32>
    %214 = vector.broadcast %213 : vector<1x128xf32> to vector<8x128xf32>
    %215 = arith.select %15, %214, %211 : vector<8x128xi1>, vector<8x128xf32>
    %216 = tpu.concatenate %215, %202 in 0 : vector<8x128xf32>, vector<8x128xf32> -> vector<16x128xf32>
    %c1_i32_42 = arith.constant 1 : i32
    %217 = tpu.dynamic_rotate %216 by %c1_i32_42 dim 1 : vector<16x128xf32>, i32 -> vector<16x128xf32>
    %cst_43 = arith.constant 0.000000e+00 : f32
    %218 = vector.broadcast %cst_43 : f32 to vector<16x128xf32>
    %219 = arith.select %5, %218, %217 : vector<16x128xi1>, vector<16x128xf32>
    %c127_i32_44 = arith.constant 127 : i32
    %220 = tpu.dynamic_rotate %216 by %c127_i32_44 dim 1 : vector<16x128xf32>, i32 -> vector<16x128xf32>
    %cst_45 = arith.constant 0.000000e+00 : f32
    %221 = vector.broadcast %cst_45 : f32 to vector<16x128xf32>
    %222 = arith.select %7, %221, %220 : vector<16x128xi1>, vector<16x128xf32>
    %223 = tpu.concatenate %219, %216, %222 in 0 : vector<16x128xf32>, vector<16x128xf32>, vector<16x128xf32> -> vector<48x128xf32>
    %cst_46 = arith.constant dense<0.000000e+00> : vector<64x128xf32>
    %224 = tpu.matmul %0, %223, %cst_46 {dimension_numbers = #tpu.dot_dimension_numbers<[1], [0], [0], [1], [0, 0, 1, 1], [], []>} : vector<64x48xf32>, vector<48x128xf32>, vector<64x128xf32> -> vector<64x128xf32>
    %225 = math.tanh %224 : vector<64x128xf32>
    %cst_47 = arith.constant 5.000000e-01 : f32
    %226 = vector.broadcast %cst_47 : f32 to vector<64x128xf32>
    %227 = arith.mulf %226, %225 : vector<64x128xf32>
    %cst_48 = arith.constant 5.000000e-01 : f32
    %228 = vector.broadcast %cst_48 : f32 to vector<64x128xf32>
    %229 = arith.addf %227, %228 : vector<64x128xf32>
    %230 = arith.select %24, %229, %225 : vector<64x128xi1>, vector<64x128xf32>
    %231 = vector.extract_strided_slice %230 {offsets = [0, 0], sizes = [32, 128], strides = [1, 1]} : vector<64x128xf32> to vector<32x128xf32>
    %232 = vector.extract_strided_slice %230 {offsets = [32, 0], sizes = [32, 128], strides = [1, 1]} : vector<64x128xf32> to vector<32x128xf32>
    %233 = vector.extract_strided_slice %232 {offsets = [0, 0], sizes = [8, 128], strides = [1, 1]} : vector<32x128xf32> to vector<8x128xf32>
    %234 = vector.extract_strided_slice %232 {offsets = [8, 0], sizes = [8, 128], strides = [1, 1]} : vector<32x128xf32> to vector<8x128xf32>
    %235 = vector.extract_strided_slice %232 {offsets = [16, 0], sizes = [8, 128], strides = [1, 1]} : vector<32x128xf32> to vector<8x128xf32>
    %236 = vector.extract_strided_slice %232 {offsets = [24, 0], sizes = [8, 128], strides = [1, 1]} : vector<32x128xf32> to vector<8x128xf32>
    %237 = arith.mulf %234, %200 : vector<8x128xf32>
    %238 = arith.mulf %233, %236 : vector<8x128xf32>
    %239 = arith.addf %237, %238 : vector<8x128xf32>
    %240 = math.tanh %239 : vector<8x128xf32>
    %241 = arith.mulf %235, %240 : vector<8x128xf32>
    %242 = vector.extract_strided_slice %231 {offsets = [0, 0], sizes = [8, 128], strides = [1, 1]} : vector<32x128xf32> to vector<8x128xf32>
    %243 = vector.extract_strided_slice %231 {offsets = [8, 0], sizes = [8, 128], strides = [1, 1]} : vector<32x128xf32> to vector<8x128xf32>
    %244 = vector.extract_strided_slice %231 {offsets = [16, 0], sizes = [8, 128], strides = [1, 1]} : vector<32x128xf32> to vector<8x128xf32>
    %245 = vector.extract_strided_slice %231 {offsets = [24, 0], sizes = [8, 128], strides = [1, 1]} : vector<32x128xf32> to vector<8x128xf32>
    %246 = arith.mulf %243, %209 : vector<8x128xf32>
    %247 = arith.mulf %242, %245 : vector<8x128xf32>
    %248 = arith.addf %246, %247 : vector<8x128xf32>
    %249 = math.tanh %248 : vector<8x128xf32>
    %250 = arith.mulf %244, %249 : vector<8x128xf32>
    %251 = vector.extract_strided_slice %2 {offsets = [6, 0], sizes = [1, 128], strides = [1, 1]} : vector<8x128xf32> to vector<1x128xf32>
    %252 = vector.shape_cast %251 : vector<1x128xf32> to vector<1x128xf32>
    %253 = vector.broadcast %252 : vector<1x128xf32> to vector<8x128xf32>
    %254 = arith.select %15, %253, %250 : vector<8x128xi1>, vector<8x128xf32>
    %255 = tpu.concatenate %254, %241 in 0 : vector<8x128xf32>, vector<8x128xf32> -> vector<16x128xf32>
    %c1_i32_49 = arith.constant 1 : i32
    %256 = tpu.dynamic_rotate %255 by %c1_i32_49 dim 1 : vector<16x128xf32>, i32 -> vector<16x128xf32>
    %cst_50 = arith.constant 0.000000e+00 : f32
    %257 = vector.broadcast %cst_50 : f32 to vector<16x128xf32>
    %258 = arith.select %5, %257, %256 : vector<16x128xi1>, vector<16x128xf32>
    %c127_i32_51 = arith.constant 127 : i32
    %259 = tpu.dynamic_rotate %255 by %c127_i32_51 dim 1 : vector<16x128xf32>, i32 -> vector<16x128xf32>
    %cst_52 = arith.constant 0.000000e+00 : f32
    %260 = vector.broadcast %cst_52 : f32 to vector<16x128xf32>
    %261 = arith.select %7, %260, %259 : vector<16x128xi1>, vector<16x128xf32>
    %262 = tpu.concatenate %258, %255, %261 in 0 : vector<16x128xf32>, vector<16x128xf32>, vector<16x128xf32> -> vector<48x128xf32>
    %cst_53 = arith.constant dense<0.000000e+00> : vector<64x128xf32>
    %263 = tpu.matmul %0, %262, %cst_53 {dimension_numbers = #tpu.dot_dimension_numbers<[1], [0], [0], [1], [0, 0, 1, 1], [], []>} : vector<64x48xf32>, vector<48x128xf32>, vector<64x128xf32> -> vector<64x128xf32>
    %264 = math.tanh %263 : vector<64x128xf32>
    %cst_54 = arith.constant 5.000000e-01 : f32
    %265 = vector.broadcast %cst_54 : f32 to vector<64x128xf32>
    %266 = arith.mulf %265, %264 : vector<64x128xf32>
    %cst_55 = arith.constant 5.000000e-01 : f32
    %267 = vector.broadcast %cst_55 : f32 to vector<64x128xf32>
    %268 = arith.addf %266, %267 : vector<64x128xf32>
    %269 = arith.select %24, %268, %264 : vector<64x128xi1>, vector<64x128xf32>
    %270 = vector.extract_strided_slice %269 {offsets = [0, 0], sizes = [32, 128], strides = [1, 1]} : vector<64x128xf32> to vector<32x128xf32>
    %271 = vector.extract_strided_slice %269 {offsets = [32, 0], sizes = [32, 128], strides = [1, 1]} : vector<64x128xf32> to vector<32x128xf32>
    %272 = vector.extract_strided_slice %271 {offsets = [0, 0], sizes = [8, 128], strides = [1, 1]} : vector<32x128xf32> to vector<8x128xf32>
    %273 = vector.extract_strided_slice %271 {offsets = [8, 0], sizes = [8, 128], strides = [1, 1]} : vector<32x128xf32> to vector<8x128xf32>
    %274 = vector.extract_strided_slice %271 {offsets = [16, 0], sizes = [8, 128], strides = [1, 1]} : vector<32x128xf32> to vector<8x128xf32>
    %275 = vector.extract_strided_slice %271 {offsets = [24, 0], sizes = [8, 128], strides = [1, 1]} : vector<32x128xf32> to vector<8x128xf32>
    %276 = arith.mulf %273, %239 : vector<8x128xf32>
    %277 = arith.mulf %272, %275 : vector<8x128xf32>
    %278 = arith.addf %276, %277 : vector<8x128xf32>
    %279 = math.tanh %278 : vector<8x128xf32>
    %280 = arith.mulf %274, %279 : vector<8x128xf32>
    %281 = vector.extract_strided_slice %270 {offsets = [0, 0], sizes = [8, 128], strides = [1, 1]} : vector<32x128xf32> to vector<8x128xf32>
    %282 = vector.extract_strided_slice %270 {offsets = [8, 0], sizes = [8, 128], strides = [1, 1]} : vector<32x128xf32> to vector<8x128xf32>
    %283 = vector.extract_strided_slice %270 {offsets = [16, 0], sizes = [8, 128], strides = [1, 1]} : vector<32x128xf32> to vector<8x128xf32>
    %284 = vector.extract_strided_slice %270 {offsets = [24, 0], sizes = [8, 128], strides = [1, 1]} : vector<32x128xf32> to vector<8x128xf32>
    %285 = arith.mulf %282, %248 : vector<8x128xf32>
    %286 = arith.mulf %281, %284 : vector<8x128xf32>
    %287 = arith.addf %285, %286 : vector<8x128xf32>
    %288 = math.tanh %287 : vector<8x128xf32>
    %289 = arith.mulf %283, %288 : vector<8x128xf32>
    %290 = vector.extract_strided_slice %2 {offsets = [7, 0], sizes = [1, 128], strides = [1, 1]} : vector<8x128xf32> to vector<1x128xf32>
    %291 = vector.shape_cast %290 : vector<1x128xf32> to vector<1x128xf32>
    %292 = vector.broadcast %291 : vector<1x128xf32> to vector<8x128xf32>
    %293 = arith.select %15, %292, %289 : vector<8x128xi1>, vector<8x128xf32>
    %294 = tpu.concatenate %293, %280 in 0 : vector<8x128xf32>, vector<8x128xf32> -> vector<16x128xf32>
    %c1_i32_56 = arith.constant 1 : i32
    %295 = tpu.dynamic_rotate %294 by %c1_i32_56 dim 1 : vector<16x128xf32>, i32 -> vector<16x128xf32>
    %cst_57 = arith.constant 0.000000e+00 : f32
    %296 = vector.broadcast %cst_57 : f32 to vector<16x128xf32>
    %297 = arith.select %5, %296, %295 : vector<16x128xi1>, vector<16x128xf32>
    %c127_i32_58 = arith.constant 127 : i32
    %298 = tpu.dynamic_rotate %294 by %c127_i32_58 dim 1 : vector<16x128xf32>, i32 -> vector<16x128xf32>
    %cst_59 = arith.constant 0.000000e+00 : f32
    %299 = vector.broadcast %cst_59 : f32 to vector<16x128xf32>
    %300 = arith.select %7, %299, %298 : vector<16x128xi1>, vector<16x128xf32>
    %301 = tpu.concatenate %297, %294, %300 in 0 : vector<16x128xf32>, vector<16x128xf32>, vector<16x128xf32> -> vector<48x128xf32>
    %cst_60 = arith.constant dense<0.000000e+00> : vector<64x128xf32>
    %302 = tpu.matmul %0, %301, %cst_60 {dimension_numbers = #tpu.dot_dimension_numbers<[1], [0], [0], [1], [0, 0, 1, 1], [], []>} : vector<64x48xf32>, vector<48x128xf32>, vector<64x128xf32> -> vector<64x128xf32>
    %303 = math.tanh %302 : vector<64x128xf32>
    %cst_61 = arith.constant 5.000000e-01 : f32
    %304 = vector.broadcast %cst_61 : f32 to vector<64x128xf32>
    %305 = arith.mulf %304, %303 : vector<64x128xf32>
    %cst_62 = arith.constant 5.000000e-01 : f32
    %306 = vector.broadcast %cst_62 : f32 to vector<64x128xf32>
    %307 = arith.addf %305, %306 : vector<64x128xf32>
    %308 = arith.select %24, %307, %303 : vector<64x128xi1>, vector<64x128xf32>
    %309 = vector.extract_strided_slice %308 {offsets = [0, 0], sizes = [32, 128], strides = [1, 1]} : vector<64x128xf32> to vector<32x128xf32>
    %310 = vector.extract_strided_slice %308 {offsets = [32, 0], sizes = [32, 128], strides = [1, 1]} : vector<64x128xf32> to vector<32x128xf32>
    %311 = vector.extract_strided_slice %310 {offsets = [0, 0], sizes = [8, 128], strides = [1, 1]} : vector<32x128xf32> to vector<8x128xf32>
    %312 = vector.extract_strided_slice %310 {offsets = [8, 0], sizes = [8, 128], strides = [1, 1]} : vector<32x128xf32> to vector<8x128xf32>
    %313 = vector.extract_strided_slice %310 {offsets = [16, 0], sizes = [8, 128], strides = [1, 1]} : vector<32x128xf32> to vector<8x128xf32>
    %314 = vector.extract_strided_slice %310 {offsets = [24, 0], sizes = [8, 128], strides = [1, 1]} : vector<32x128xf32> to vector<8x128xf32>
    %315 = arith.mulf %312, %278 : vector<8x128xf32>
    %316 = arith.mulf %311, %314 : vector<8x128xf32>
    %317 = arith.addf %315, %316 : vector<8x128xf32>
    %318 = math.tanh %317 : vector<8x128xf32>
    %319 = arith.mulf %313, %318 : vector<8x128xf32>
    %320 = vector.extract_strided_slice %309 {offsets = [0, 0], sizes = [8, 128], strides = [1, 1]} : vector<32x128xf32> to vector<8x128xf32>
    %321 = vector.extract_strided_slice %309 {offsets = [8, 0], sizes = [8, 128], strides = [1, 1]} : vector<32x128xf32> to vector<8x128xf32>
    %322 = vector.extract_strided_slice %309 {offsets = [16, 0], sizes = [8, 128], strides = [1, 1]} : vector<32x128xf32> to vector<8x128xf32>
    %323 = vector.extract_strided_slice %309 {offsets = [24, 0], sizes = [8, 128], strides = [1, 1]} : vector<32x128xf32> to vector<8x128xf32>
    %324 = arith.mulf %321, %287 : vector<8x128xf32>
    %325 = arith.mulf %320, %323 : vector<8x128xf32>
    %326 = arith.addf %324, %325 : vector<8x128xf32>
    %327 = math.tanh %326 : vector<8x128xf32>
    %328 = arith.mulf %322, %327 : vector<8x128xf32>
    %329 = vector.shape_cast %26 : vector<1x128xf32> to vector<1x128xf32>
    %330 = vector.broadcast %329 : vector<1x128xf32> to vector<8x128xf32>
    %331 = arith.select %15, %330, %328 : vector<8x128xi1>, vector<8x128xf32>
    %332 = tpu.concatenate %331, %319 in 0 : vector<8x128xf32>, vector<8x128xf32> -> vector<16x128xf32>
    %c1_i32_63 = arith.constant 1 : i32
    %333 = tpu.dynamic_rotate %332 by %c1_i32_63 dim 1 : vector<16x128xf32>, i32 -> vector<16x128xf32>
    %cst_64 = arith.constant 0.000000e+00 : f32
    %334 = vector.broadcast %cst_64 : f32 to vector<16x128xf32>
    %335 = arith.select %5, %334, %333 : vector<16x128xi1>, vector<16x128xf32>
    %c127_i32_65 = arith.constant 127 : i32
    %336 = tpu.dynamic_rotate %332 by %c127_i32_65 dim 1 : vector<16x128xf32>, i32 -> vector<16x128xf32>
    %cst_66 = arith.constant 0.000000e+00 : f32
    %337 = vector.broadcast %cst_66 : f32 to vector<16x128xf32>
    %338 = arith.select %7, %337, %336 : vector<16x128xi1>, vector<16x128xf32>
    %339 = tpu.concatenate %335, %332, %338 in 0 : vector<16x128xf32>, vector<16x128xf32>, vector<16x128xf32> -> vector<48x128xf32>
    %cst_67 = arith.constant dense<0.000000e+00> : vector<64x128xf32>
    %340 = tpu.matmul %0, %339, %cst_67 {dimension_numbers = #tpu.dot_dimension_numbers<[1], [0], [0], [1], [0, 0, 1, 1], [], []>} : vector<64x48xf32>, vector<48x128xf32>, vector<64x128xf32> -> vector<64x128xf32>
    %341 = math.tanh %340 : vector<64x128xf32>
    %cst_68 = arith.constant 5.000000e-01 : f32
    %342 = vector.broadcast %cst_68 : f32 to vector<64x128xf32>
    %343 = arith.mulf %342, %341 : vector<64x128xf32>
    %cst_69 = arith.constant 5.000000e-01 : f32
    %344 = vector.broadcast %cst_69 : f32 to vector<64x128xf32>
    %345 = arith.addf %343, %344 : vector<64x128xf32>
    %346 = arith.select %24, %345, %341 : vector<64x128xi1>, vector<64x128xf32>
    %347 = vector.extract_strided_slice %346 {offsets = [32, 0], sizes = [32, 128], strides = [1, 1]} : vector<64x128xf32> to vector<32x128xf32>
    %348 = vector.extract_strided_slice %347 {offsets = [0, 0], sizes = [8, 128], strides = [1, 1]} : vector<32x128xf32> to vector<8x128xf32>
    %349 = vector.extract_strided_slice %347 {offsets = [8, 0], sizes = [8, 128], strides = [1, 1]} : vector<32x128xf32> to vector<8x128xf32>
    %350 = vector.extract_strided_slice %347 {offsets = [16, 0], sizes = [8, 128], strides = [1, 1]} : vector<32x128xf32> to vector<8x128xf32>
    %351 = vector.extract_strided_slice %347 {offsets = [24, 0], sizes = [8, 128], strides = [1, 1]} : vector<32x128xf32> to vector<8x128xf32>
    %352 = arith.mulf %349, %317 : vector<8x128xf32>
    %353 = arith.mulf %348, %351 : vector<8x128xf32>
    %354 = arith.addf %352, %353 : vector<8x128xf32>
    %355 = math.tanh %354 : vector<8x128xf32>
    %356 = arith.mulf %350, %355 : vector<8x128xf32>
    %357 = tpu.concatenate %85, %124, %163, %202, %241, %280, %319, %356 in 0 : vector<8x128xf32>, vector<8x128xf32>, vector<8x128xf32>, vector<8x128xf32>, vector<8x128xf32>, vector<8x128xf32>, vector<8x128xf32>, vector<8x128xf32> -> vector<64x128xf32>
    %c1_i32_70 = arith.constant 1 : i32
    %358 = tpu.dynamic_rotate %357 by %c1_i32_70 dim 1 : vector<64x128xf32>, i32 -> vector<64x128xf32>
    %cst_71 = arith.constant 0.000000e+00 : f32
    %359 = vector.broadcast %cst_71 : f32 to vector<64x128xf32>
    %360 = arith.select %10, %359, %358 : vector<64x128xi1>, vector<64x128xf32>
    %c127_i32_72 = arith.constant 127 : i32
    %361 = tpu.dynamic_rotate %357 by %c127_i32_72 dim 1 : vector<64x128xf32>, i32 -> vector<64x128xf32>
    %cst_73 = arith.constant 0.000000e+00 : f32
    %362 = vector.broadcast %cst_73 : f32 to vector<64x128xf32>
    %363 = arith.select %12, %362, %361 : vector<64x128xi1>, vector<64x128xf32>
    %364 = tpu.concatenate %360, %357, %363 in 0 : vector<64x128xf32>, vector<64x128xf32>, vector<64x128xf32> -> vector<192x128xf32>
    %cst_74 = arith.constant dense<0.000000e+00> : vector<8x128xf32>
    %365 = tpu.matmul %1, %364, %cst_74 {dimension_numbers = #tpu.dot_dimension_numbers<[1], [0], [0], [1], [0, 0, 1, 1], [], []>} : vector<8x192xf32>, vector<192x128xf32>, vector<8x128xf32> -> vector<8x128xf32>
    %366 = vector.shape_cast %365 : vector<8x128xf32> to vector<1x8x128xf32>
    %cst_75 = arith.constant dense<0.000000e+00> : vector<1xf32>
    %367 = vector.multi_reduction <add>, %366, %cst_75 [1, 2] : vector<1x8x128xf32> to vector<1xf32>
    %368 = vector.shape_cast %367 : vector<1xf32> to vector<1x1x1xf32>
    %369 = vector.extract %368[0, 0, 0] : f32 from vector<1x1x1xf32>
    %370 = vector.broadcast %369 : f32 to vector<1x1xf32>
    %cst_76 = arith.constant 1.024000e+03 : f32
    %371 = vector.broadcast %cst_76 : f32 to vector<1x1xf32>
    %372 = arith.divf %370, %371 : vector<1x1xf32>
    %373 = vector.broadcast %372 : vector<1x1xf32> to vector<8x128xf32>
    %374 = arith.subf %365, %373 : vector<8x128xf32>
    %375 = arith.mulf %374, %374 : vector<8x128xf32>
    %376 = vector.shape_cast %375 : vector<8x128xf32> to vector<1x8x128xf32>
    %cst_77 = arith.constant dense<0.000000e+00> : vector<1xf32>
    %377 = vector.multi_reduction <add>, %376, %cst_77 [1, 2] : vector<1x8x128xf32> to vector<1xf32>
    %378 = vector.shape_cast %377 : vector<1xf32> to vector<1x1x1xf32>
    %379 = vector.extract %378[0, 0, 0] : f32 from vector<1x1x1xf32>
    %380 = vector.broadcast %379 : f32 to vector<1x1xf32>
    %cst_78 = arith.constant 1.024000e+03 : f32
    %381 = vector.broadcast %cst_78 : f32 to vector<1x1xf32>
    %382 = arith.divf %380, %381 : vector<1x1xf32>
    %cst_79 = arith.constant 9.99999974E-6 : f32
    %383 = vector.broadcast %cst_79 : f32 to vector<1x1xf32>
    %384 = arith.addf %382, %383 : vector<1x1xf32>
    %385 = math.rsqrt %384 : vector<1x1xf32>
    %c0_80 = arith.constant 0 : index
    %386 = memref.load %arg3[%c0_80] : memref<2xf32, #tpu.memory_space<smem>>
    %387 = vector.broadcast %386 : f32 to vector<1x1xf32>
    %388 = arith.mulf %385, %387 : vector<1x1xf32>
    %389 = vector.broadcast %388 : vector<1x1xf32> to vector<8x128xf32>
    %390 = arith.mulf %374, %389 : vector<8x128xf32>
    %c1 = arith.constant 1 : index
    %391 = memref.load %arg3[%c1] : memref<2xf32, #tpu.memory_space<smem>>
    %392 = vector.broadcast %391 : f32 to vector<8x128xf32>
    %393 = arith.addf %390, %392 : vector<8x128xf32>
    %cst_81 = arith.constant 0.000000e+00 : f32
    %394 = vector.broadcast %cst_81 : f32 to vector<8x128xf32>
    %395 = arith.maximumf %393, %394 : vector<8x128xf32>
    %c0_82 = arith.constant 0 : index
    %c0_83 = arith.constant 0 : index
    %396 = vector.load %arg4[%c0_82, %c0_83] : memref<8x128xf32, #tpu.memory_space<vmem>>, vector<8x128xf32>
    tpu.vector_store %arg4[%c0_82, %c0_83], %395 {strides = array<i32>} : memref<8x128xf32, #tpu.memory_space<vmem>>, vector<8x128xf32>,
    return
  }
}

</mosaic_0001>

<bundles_post_ra>
// kernel: squeeze.4
= control target key start
LH: loop header
LB: loop body
LE: loop exit
PB: predicated region body
PF: predicated region fallthrough
CT: control target
= control target key end

     0   :  { %s255_s10 = smov 122   ;;  %s256_s13 = smov 116   ;;  %vm3_vm0 = vcmask 48128   ;;  %s379_s0 = inlined_call_operand.vmem [shape: f32[24,7,1,3], index: 0, kind: input, shape index: {}]   ;;  %s380_s1 = inlined_call_operand.vmem [shape: f32[4,6,7,3], index: 1, kind: output, shape index: {}]  }
   0x1   :  { %v227_v0 = vld [vmem:[%s379_s0 + $0x12] sm:$0x1f]   ;;  %v20_v1 = vld.sshfl [vmem:[%s379_s0] sm:$0xff pattern:$0x86543210]   ;;  %s257_s18 = smov 110  }
   0x2   :  { %39 = vrot.lane.b32.xlu1 %v227_v0, %s255_s10  ;;  %21 = vrot.lane.b32.xlu0 %v20_v1, %s255_s10  ;;  %v228_v2 = vld.sshfl [vmem:[%s379_s0 + $0x9] sm:$0xff pattern:$0x87543210]   ;;  %v229_v3 = vld [vmem:[%s379_s0 + $0x12] sm:$0x1f]  }
   0x3   :  { %56 = vrot.lane.b32.xlu2 %v228_v2, %s256_s13  ;;  %v231_v4 = vld [vmem:[%s379_s0 + $0x12] sm:$0x1f]   ;;  %v224_v8 = vld [vmem:[%s379_s0 + $0x8] sm:$0x7f]   ;;  %v2_v9 = vld [vmem:[%s379_s0] sm:$0x7f]  }
   0x4   :  { %v225_v5 = vld [vmem:[%s379_s0 + $0x10] sm:$0x7f]   ;;  %10 = vst.msk [vmem:[#allocation0 + $0x38] ss:$8 sm:$0xf] %vm3_vm0, %v224_v8  }
   0x5   :  { %19 = vst.msk [vmem:[#allocation0 + $0x70] ss:$8 sm:$0x70] %vm3_vm0, %v225_v5  }
   0x6   :  { %17 = vst.msk [vmem:[#allocation0 + $0x70] ss:$8 sm:$0xf] %vm3_vm0, %v225_v5  }
   0x7   :  { %12 = vst.msk [vmem:[#allocation0 + $0x38] ss:$8 sm:$0x70] %vm3_vm0, %v224_v8  }
   0x8   :  { %4 = vst.msk [vmem:[#allocation0] ss:$8 sm:$0xf] %vm3_vm0, %v2_v9  }
   0x9   :  { %5 = vst.msk [vmem:[#allocation0] ss:$8 sm:$0x70] %vm3_vm0, %v2_v9  }
   0xa   :  { %47 = vrot.lane.b32.xlu1 %v20_v1, %s256_s13  ;;  %30 = vrot.lane.b32.xlu0 %v228_v2, %s255_s10 }
   0xb   :  { %65 = vrot.lane.b32.xlu2 %v229_v3, %s256_s13 }
  0x12   :  { %82 = vrot.lane.b32.xlu1 %v228_v2, %s257_s18  ;;  %73 = vrot.lane.b32.xlu0 %v20_v1, %s257_s18 }
  0x13   :  { %91 = vrot.lane.b32.xlu2 %v231_v4, %s257_s18 }
  0x5d   :  { %v57_v6 = vpop.permute.xlu2 %56  }
  0x5e   :  { %60 = vst.msk [vmem:[#allocation0 + $0x42] ss:$8 sm:$0xf] %vm3_vm0, %v57_v6  }
  0x5f   :  { %62 = vst.msk [vmem:[#allocation0 + $0x42] ss:$8 sm:$0xf0] %vm3_vm0, %v57_v6  }
  0x65   :  { %v66_v7 = vpop.permute.xlu2 %65  }
  0x66   :  { %69 = vst.msk [vmem:[#allocation0 + $0x82] ss:$8 sm:$0xf] %vm3_vm0, %v66_v7  }
  0x67   :  { %71 = vst.msk [vmem:[#allocation0 + $0x9e] sm:$0x10] %vm3_vm0, %v66_v7  }
  0x6d   :  { %v92_v10 = vpop.permute.xlu2 %91  }
  0x6e   :  { %95 = vst.msk [vmem:[#allocation0 + $0x83] ss:$8 sm:$0xf] %vm3_vm0, %v92_v10  }
  0x6f   :  { %97 = vst.msk [vmem:[#allocation0 + $0x9f] sm:$0x10] %vm3_vm0, %v92_v10  }
  0x74   :  { %v40_v11 = vpop.permute.xlu1 %39   ;;  %v22_v12 = vpop.permute.xlu0 %21  }
  0x75   :  { %43 = vst.msk [vmem:[#allocation0 + $0x81] ss:$8 sm:$0xf] %vm3_vm0, %v40_v11  }
  0x76   :  { %45 = vst.msk [vmem:[#allocation0 + $0x9d] sm:$0x10] %vm3_vm0, %v40_v11  }
  0x77   :  { %25 = vst.msk [vmem:[#allocation0 + $0x1] ss:$8 sm:$0xf] %vm3_vm0, %v22_v12  }
  0x78   :  { %27 = vst.msk [vmem:[#allocation0 + $0x1] ss:$8 sm:$0xf0] %vm3_vm0, %v22_v12  }
  0x7c   :  { %v195_v13 = vld [vmem:[#allocation0 + $0x80] sm:$0xf]  ;;  %v201_v14 = vld [vmem:[#allocation0 + $0x88] sm:$0xf]  ;;  %v207_v15 = vld [vmem:[#allocation0 + $0x90] sm:$0xf]  ;;  %v48_v16 = vpop.permute.xlu1 %47   ;;  %v31_v17 = vpop.permute.xlu0 %30  }
  0x7d   :  { %v213_v18 = vld [vmem:[#allocation0 + $0x98] sm:$0xf]  ;;  %247 = vst [vmem:[%s380_s1 + $0x40] sm:$0xf] %v195_v13  ;;  %v219_v19 = vld [vmem:[#allocation0 + $0xa0] sm:$0xf] }
  0x7e   :  { %248 = vst [vmem:[%s380_s1 + $0x44] sm:$0xf] %v201_v14 }
  0x7f   :  { %249 = vst [vmem:[%s380_s1 + $0x48] sm:$0xf] %v207_v15 }
  0x80   :  { %250 = vst [vmem:[%s380_s1 + $0x4c] sm:$0xf] %v213_v18 }
  0x81   :  { %251 = vst [vmem:[%s380_s1 + $0x50] sm:$0xf] %v219_v19 }
  0x82   :  { %51 = vst.msk [vmem:[#allocation0 + $0x2] ss:$8 sm:$0xf] %vm3_vm0, %v48_v16  }
  0x83   :  { %53 = vst.msk [vmem:[#allocation0 + $0x2] ss:$8 sm:$0xf0] %vm3_vm0, %v48_v16  }
  0x84   :  { %34 = vst.msk [vmem:[#allocation0 + $0x41] ss:$8 sm:$0xf] %vm3_vm0, %v31_v17   ;;  %v83_v20 = vpop.permute.xlu1 %82   ;;  %v74_v21 = vpop.permute.xlu0 %73  }
  0x85   :  { %36 = vst.msk [vmem:[#allocation0 + $0x41] ss:$8 sm:$0xf0] %vm3_vm0, %v31_v17  }
  0x86   :  { %86 = vst.msk [vmem:[#allocation0 + $0x43] ss:$8 sm:$0xf] %vm3_vm0, %v83_v20  }
  0x87   :  { %88 = vst.msk [vmem:[#allocation0 + $0x43] ss:$8 sm:$0xf0] %vm3_vm0, %v83_v20  }
  0x88   :  { %77 = vst.msk [vmem:[#allocation0 + $0x3] ss:$8 sm:$0xf] %vm3_vm0, %v74_v21  }
  0x89   :  { %79 = vst.msk [vmem:[#allocation0 + $0x3] ss:$8 sm:$0xf0] %vm3_vm0, %v74_v21  }
  0x8d   :  { %v147_v22 = vld [vmem:[#allocation0 + $0x40] sm:$0xf]  ;;  %v153_v23 = vld [vmem:[#allocation0 + $0x48] sm:$0xf]  ;;  %v159_v24 = vld [vmem:[#allocation0 + $0x50] sm:$0xf] }
  0x8e   :  { %239 = vst [vmem:[%s380_s1 + $0x20] sm:$0xf] %v147_v22  ;;  %v165_v25 = vld [vmem:[#allocation0 + $0x58] sm:$0xf]  ;;  %v171_v26 = vld [vmem:[#allocation0 + $0x60] sm:$0xf] }
  0x8f   :  { %240 = vst [vmem:[%s380_s1 + $0x24] sm:$0xf] %v153_v23  ;;  %v177_v27 = vld [vmem:[#allocation0 + $0x68] sm:$0xf]  ;;  %v183_v28 = vld [vmem:[#allocation0 + $0x70] sm:$0xf] }
  0x90   :  { %241 = vst [vmem:[%s380_s1 + $0x28] sm:$0xf] %v159_v24  ;;  %v189_v29 = vld [vmem:[#allocation0 + $0x78] sm:$0xf]  ;;  %v100_v30 = vld [vmem:[#allocation0] sm:$0xf] }
  0x91   :  { %242 = vst [vmem:[%s380_s1 + $0x2c] sm:$0xf] %v165_v25  ;;  %v105_v31 = vld [vmem:[#allocation0 + $0x8] sm:$0xf]  ;;  %v111_v32 = vld [vmem:[#allocation0 + $0x10] sm:$0xf] }
  0x92   :  { %243 = vst [vmem:[%s380_s1 + $0x30] sm:$0xf] %v171_v26  ;;  %v117_v33 = vld [vmem:[#allocation0 + $0x18] sm:$0xf]  ;;  %v123_v34 = vld [vmem:[#allocation0 + $0x20] sm:$0xf] }
  0x93   :  { %244 = vst [vmem:[%s380_s1 + $0x34] sm:$0xf] %v177_v27  ;;  %v129_v35 = vld [vmem:[#allocation0 + $0x28] sm:$0xf]  ;;  %v135_v36 = vld [vmem:[#allocation0 + $0x30] sm:$0xf] }
  0x94   :  { %245 = vst [vmem:[%s380_s1 + $0x38] sm:$0xf] %v183_v28  ;;  %v141_v37 = vld [vmem:[#allocation0 + $0x38] sm:$0xf] }
  0x95   :  { %246 = vst [vmem:[%s380_s1 + $0x3c] sm:$0xf] %v189_v29 }
  0x96   :  { %103 = vst [vmem:[%s380_s1] sm:$0xf] %v100_v30 }
  0x97   :  { %232 = vst [vmem:[%s380_s1 + $0x4] sm:$0xf] %v105_v31 }
  0x98   :  { %233 = vst [vmem:[%s380_s1 + $0x8] sm:$0xf] %v111_v32 }
  0x99   :  { %234 = vst [vmem:[%s380_s1 + $0xc] sm:$0xf] %v117_v33 }
  0x9a   :  { %235 = vst [vmem:[%s380_s1 + $0x10] sm:$0xf] %v123_v34 }
  0x9b   :  { %236 = vst [vmem:[%s380_s1 + $0x14] sm:$0xf] %v129_v35 }
  0x9c   :  { %237 = vst [vmem:[%s380_s1 + $0x18] sm:$0xf] %v135_v36 }
  0x9d   :  { %238 = vst [vmem:[%s380_s1 + $0x1c] sm:$0xf] %v141_v37 }

// kernel: oli_network_2.1
= control target key start
LH: loop header
LB: loop body
LE: loop exit
PB: predicated region body
PF: predicated region fallthrough
CT: control target
= control target key end

     0   :  { %9 = vsyncpa [#allocation4], 0  ;;  %s2083_s0 = inlined_call_operand.vmem [shape: f32[8,128], index: 0, kind: input, shape index: {}]   ;;  %s2084_s1 = inlined_call_operand.vmem [shape: f32[64,48], index: 1, kind: input, shape index: {}]   ;;  %s2085_s2 = inlined_call_operand.vmem [shape: f32[8,192], index: 2, kind: input, shape index: {}]   ;;  %s2086_s3 = inlined_call_operand.vmem [shape: f32[2], index: 3, kind: input, shape index: {}]   ;;  %s2087_s4 = inlined_call_operand.hbm [shape: f32[8,128], index: 4, kind: output, shape index: {}]  }
   0x1   :  { %10 = vsyncpa [#allocation3], 0  ;;  %s22_s17 = sshll.u32 %s2086_s3, 4  ;;  %s1478_s18 = smov [#allocation2]   ;;  %s23_s17 = int_to_ptr.vmem [resolvable:$true] %s22_s17 }
   0x2   :  { %25 = dma.vmem_to_smem %s23_s17, 16, %s1478_s18, [#allocation4]  }
   0x3   :  { %1474 = dma.done.wait [#allocation4], 16  }
   0x4   :  { %1475 = vsyncadd [#allocation4], 4294967280 }
   0x5   :  { %30 = sfence }
   0x6   :  { %v1515_v0 = vld [vmem:[%s2083_s0] sm:$0xff]  ;;  %v42_v1 = vlaneseq  ;;  %v1479_v2 = vmov 0.0   ;;  %s1480_s21 = smov 127   ;;  %s1481_s22 = smov 1   ;;  %vm110_vm3 = vcmask 392192   ;;  %v1583_v12 = vld [vmem:[%s2084_s1 + $0x10] sm:$0xff] }
   0x7   :  { %106 = vrot.lane.b32.xlu0 %v1479_v2, %s1480_s21  ;;  %100 = vrot.lane.b32.xlu1 %v1479_v2, %s1481_s22  ;;  %v96_v4 = vperm.slane %v1515_v0, 0  ;;  %v1578_v11 = vld [vmem:[%s2084_s1] sm:$0xff]  ;;  %v1602_v13 = vld [vmem:[%s2084_s1 + $0x8] sm:$0xff]  ;;  %v193_v32 = vperm.slane %v1515_v0, 1  ;;  %vm943_vm5 = vcmask 523264   ;;  %s1029_s29 = sld [smem:[#allocation2]] }
   0x8   :  { %v1521_v3 = vshrl.u32 %v42_v1, 7  ;;  %v1529_v6 = vand.u32 127, %v42_v1  ;;  %v1607_v14 = vld [vmem:[%s2084_s1 + $0x18] sm:$0xff]  ;;  %v1623_v37 = vld [vmem:[%s2084_s1 + $0x20] sm:$0xff]  ;;  %v1638_v39 = vld [vmem:[%s2084_s1 + $0x28] sm:$0xff]  ;;  %s1235_s30 = sld [smem:[#allocation2 + $0x1]] }
   0x9   :  { %v1647_v40 = vld [vmem:[%s2084_s1 + $0x30] sm:$0xff]  ;;  %v1656_v41 = vld [vmem:[%s2084_s1 + $0x38] sm:$0xff]  ;;  %s1483_s5 = smov [#allocation5]   ;;  %s1045_s9 = sshll.u32 %s2087_s4, 4  ;;  %s1046_s9 = int_to_ptr.hbm [resolvable:$true] %s1045_s9 }
   0xa   :  { %vm48_vm0 = vcmp.eq.s32.totalorder %v1521_v3, 6  ;;  %vm1236_vm1 = vcmp.ne.s32.totalorder %v1529_v6, 127  ;;  %vm1237_vm2 = vcmp.ne.s32.totalorder %v1529_v6, 0  ;;  %v1431_v3 = vld [vmem:[%s2084_s1 + $0x8] sm:$0xff]  ;;  %s1043_s6 = sshll.u32 %s1483_s5, 4  ;;  %s1044_s6 = int_to_ptr.vmem [resolvable:$true] %s1043_s6 }
   0xb   :  { %v97_v5 = vsel %vm48_vm0, %v96_v4, 0.0  ;;  %vm1188_vm4 = vmneg %vm48_vm0 }
   0xf   :  { %104 = vrot.lane.b32.xlu0 %v97_v5, %s1480_s21  ;;  %98 = vrot.lane.b32.xlu1 %v97_v5, %s1481_s22 }
  0x79   :  { %v107_v7 = vpop.permute.xlu0 %106  ;;  %v1540_v8 = vpop.permute.xlu1 %100 }
  0x7a   :  { %1056 = vmatpush.msk.msra.mxu0 %vm1236_vm1, %v107_v7  ;;  %1238 = vmatpush.msk.msra.mxu1 %vm1236_vm1, %v107_v7 }
  0x7b   :  { %1239 = vmatpush.msk.msra.mxu2 %vm1236_vm1, %v107_v7  ;;  %1240 = vmatpush.msk.msra.mxu3 %vm1236_vm1, %v107_v7 }
  0x81   :  { %v105_v9 = vpop.permute.xlu0 %104  ;;  %v99_v10 = vpop.permute.xlu1 %98 }
  0x82   :  { %1058 = vmatpush.msk.msra.mxu0 %vm1236_vm1, %v105_v9  ;;  %1241 = vmatpush.msk.msra.mxu1 %vm1236_vm1, %v105_v9 }
  0x83   :  { %1242 = vmatpush.msk.msra.mxu2 %vm1236_vm1, %v105_v9  ;;  %1243 = vmatpush.msk.msra.mxu3 %vm1236_vm1, %v105_v9 }
  0x84   :  { %147 = vmatpush.msra.mxu0 %v1479_v2  ;;  %1244 = vmatpush.msra.mxu1 %v1479_v2 }
  0x85   :  { %1245 = vmatpush.msra.mxu2 %v1479_v2  ;;  %1246 = vmatpush.msra.mxu3 %v1479_v2 }
  0x86   :  { %1059 = vmatpush.msk.msra.mxu0 %vm48_vm0, %v96_v4  ;;  %1247 = vmatpush.msk.msra.mxu1 %vm48_vm0, %v96_v4 }
  0x87   :  { %1248 = vmatpush.msk.msra.mxu2 %vm48_vm0, %v96_v4  ;;  %1249 = vmatpush.msk.msra.mxu3 %vm48_vm0, %v96_v4 }
  0x88   :  { %1061 = vmatpush.msk.msra.mxu0 %vm1237_vm2, %v1540_v8  ;;  %1250 = vmatpush.msk.msra.mxu1 %vm1237_vm2, %v1540_v8 }
  0x89   :  { %1251 = vmatpush.msk.msra.mxu2 %vm1237_vm2, %v1540_v8  ;;  %1252 = vmatpush.msk.msra.mxu3 %vm1237_vm2, %v1540_v8 }
  0x8a   :  { %1063 = vmatpush.msk.msra.mxu0 %vm1237_vm2, %v99_v10  ;;  %1253 = vmatpush.msk.msra.mxu1 %vm1237_vm2, %v99_v10 }
  0x8b   :  { %1254 = vmatpush.msk.msra.mxu2 %vm1237_vm2, %v99_v10  ;;  %1255 = vmatpush.msk.msra.mxu3 %vm1237_vm2, %v99_v10 }
  0x8c   :  { %1064 = vmatmul.msk.f32.vlgmr.msra.gmra.mxu0 %vm110_vm3, %v1578_v11  ;;  %1066 = vmatmul.msk.f32.vlgmr.msra.gmra.mxu1 %vm110_vm3, %v1583_v12 }
  0x8d   :  { %1073 = vmatpush.msk.msrb.mxu1 %vm1236_vm1, %v107_v7  ;;  %1068 = vmatmul.msk.f32.vlgmr.msra.gmra.mxu2 %vm110_vm3, %v1623_v37 }
  0x8e   :  { %1069 = vmatmul.msk.f32.vlgmr.msra.gmra.mxu3 %vm110_vm3, %v1638_v39 }
  0x94   :  { %1065 = vmatmul.msk.f32.gmra.mxu0 %vm110_vm3, %v1602_v13  ;;  %1067 = vmatmul.msk.f32.gmra.mxu1 %vm110_vm3, %v1607_v14 }
  0x96   :  { %1070 = vmatmul.msk.f32.gmra.mxu3 %vm110_vm3, %v1647_v40 }
  0x9e   :  { %1071 = vmatmul.msk.f32.gmra.mxu3 %vm110_vm3, %v1656_v41 }
 0x109   :  { %v152_v15 = vpop.f32.mrf.mxu0  ;;  %v158_v16 = vpop.f32.mrf.mxu1 }
 0x10a   :  { %1266 = vtanh.f32 %v152_v15 }
 0x110   :  { %v1267_v19 = vpop.eup %1266  ;;  %v164_v42 = vpop.f32.mrf.mxu2 }
 0x111   :  { %v155_v17 = vpop.f32.mrf.mxu0  ;;  %v161_v18 = vpop.f32.mrf.mxu1  ;;  %v176_v20 = vmul.f32 0.5, %v1267_v19 }
 0x112   :  { %1268 = vtanh.f32 %v155_v17  ;;  %v166_v44 = vpop.f32.mrf.mxu3 }
 0x113   :  { %1270 = vtanh.f32 %v161_v18  ;;  %v180_v24 = vadd.f32 0.5, %v176_v20 }
 0x114   :  { %1272 = vtanh.f32 %v158_v16 }
 0x118   :  { %v1269_v21 = vpop.eup %1268 }
 0x119   :  { %v177_v22 = vmul.f32 0.5, %v1269_v21  ;;  %v1271_v23 = vpop.eup %1270 }
 0x11a   :  { %v189_v27 = vmul.f32 %v1271_v23, %v180_v24  ;;  %v1273_v28 = vpop.eup %1272  ;;  %v168_v46 = vpop.f32.mrf.mxu3 }
 0x11b   :  { %v181_v25 = vadd.f32 0.5, %v177_v22  ;;  %v178_v30 = vmul.f32 0.5, %v1273_v28 }
 0x11d   :  { %v188_v26 = vmul.f32 0.0, %v181_v25  ;;  %v182_v31 = vadd.f32 0.5, %v178_v30 }
 0x11f   :  { %v190_v29 = vadd.f32 %v189_v27, %v188_v26 }
 0x121   :  { %1274 = vtanh.f32 %v190_v29 }
 0x122   :  { %v170_v50 = vpop.f32.mrf.mxu3 }
 0x127   :  { %v1275_v33 = vpop.eup %1274 }
 0x128   :  { %v192_v34 = vmul.f32 %v1275_v33, %v182_v31 }
 0x12a   :  { %v194_v35 = vsel %vm48_vm0, %v193_v32, %v192_v34 }
 0x12b   :  { %198 = vrot.lane.b32.xlu2 %v194_v35, %s1480_s21 }
 0x133   :  { %195 = vrot.lane.b32.xlu2 %v194_v35, %s1481_s22 }
 0x185   :  { %v199_v36 = vpop.permute.xlu2 %198 }
 0x186   :  { %1075 = vmatpush.msk.msrb.mxu1 %vm1236_vm1, %v199_v36 }
 0x188   :  { %213 = vmatpush.msrb.mxu1 %v1479_v2  ;;  %v284_v2 = vperm.slane %v1515_v0, 2 }
 0x18a   :  { %214 = vmatpush.msrb.mxu1 %v194_v35 }
 0x18c   :  { %1077 = vmatpush.msk.msrb.mxu1 %vm1237_vm2, %v1540_v8 }
 0x18d   :  { %v196_v38 = vpop.permute.xlu2 %195 }
 0x18e   :  { %1079 = vmatpush.msk.msrb.mxu1 %vm1237_vm2, %v196_v38 }
 0x18f   :  { %1080 = vmatmul.msk.f32.vlgmr.msrb.gmra.mxu1 %vm110_vm3, %v1578_v11 }
 0x197   :  { %1081 = vmatmul.msk.f32.gmra.mxu1 %vm110_vm3, %v1602_v13 }
 0x19f   :  { %1082 = vmatmul.msk.f32.gmra.mxu1 %vm110_vm3, %v1583_v12 }
 0x1a7   :  { %1083 = vmatmul.msk.f32.gmra.mxu1 %vm110_vm3, %v1607_v14 }
 0x1af   :  { %1084 = vmatmul.msk.f32.gmra.mxu1 %vm110_vm3, %v1623_v37 }
 0x1b7   :  { %1085 = vmatmul.msk.f32.gmra.mxu1 %vm110_vm3, %v1638_v39 }
 0x1bf   :  { %1086 = vmatmul.msk.f32.gmra.mxu1 %vm110_vm3, %v1647_v40 }
 0x1c7   :  { %1087 = vmatmul.msk.f32.gmra.mxu1 %vm110_vm3, %v1656_v41 }
 0x20c   :  { %v218_v43 = vpop.f32.mrf.mxu1 }
 0x214   :  { %v221_v45 = vpop.f32.mrf.mxu1 }
 0x215   :  { %1276 = vtanh.f32 %v221_v45 }
 0x216   :  { %1278 = vtanh.f32 %v218_v43 }
 0x21b   :  { %v1277_v48 = vpop.eup %1276 }
 0x21c   :  { %v224_v47 = vpop.f32.mrf.mxu1  ;;  %v1279_v49 = vpop.eup %1278  ;;  %v251_v51 = vmul.f32 0.5, %v1277_v48 }
 0x21d   :  { %v250_v53 = vmul.f32 0.5, %v1279_v49 }
 0x21e   :  { %v259_v54 = vadd.f32 0.5, %v251_v51 }
 0x21f   :  { %v258_v55 = vadd.f32 0.5, %v250_v53 }
 0x220   :  { %v279_v57 = vmul.f32 %v259_v54, %v190_v29 }
 0x224   :  { %v227_v52 = vpop.f32.mrf.mxu1 }
 0x225   :  { %1280 = vtanh.f32 %v227_v52 }
 0x226   :  { %1282 = vtanh.f32 %v224_v47 }
 0x22b   :  { %v1281_v56 = vpop.eup %1280 }
 0x22c   :  { %v280_v58 = vmul.f32 %v1281_v56, %v258_v55  ;;  %v230_v59 = vpop.f32.mrf.mxu1  ;;  %v1283_v60 = vpop.eup %1282  ;;  %v381_v56 = vperm.slane %v1515_v0, 3 }
 0x22d   :  { %v252_v62 = vmul.f32 0.5, %v1283_v60 }
 0x22e   :  { %v1670_v61 = vadd.f32 %v280_v58, %v279_v57 }
 0x22f   :  { %v260_v1 = vadd.f32 0.5, %v252_v62 }
 0x230   :  { %1284 = vtanh.f32 %v1670_v61 }
 0x234   :  { %v233_v63 = vpop.f32.mrf.mxu1 }
 0x235   :  { %1286 = vtanh.f32 %v233_v63 }
 0x236   :  { %v1285_v4 = vpop.eup %1284  ;;  %1288 = vtanh.f32 %v230_v59 }
 0x237   :  { %v283_v5 = vmul.f32 %v1285_v4, %v260_v1 }
 0x239   :  { %v285_v7 = vsel %vm48_vm0, %v284_v2, %v283_v5 }
 0x23a   :  { %292 = vrot.lane.b32.xlu1 %v285_v7, %s1480_s21 }
 0x23b   :  { %v1287_v9 = vpop.eup %1286 }
 0x23c   :  { %v236_v8 = vpop.f32.mrf.mxu1  ;;  %v1289_v10 = vpop.eup %1288  ;;  %v255_v15 = vmul.f32 0.5, %v1287_v9 }
 0x23d   :  { %v254_v17 = vmul.f32 0.5, %v1289_v10 }
 0x23e   :  { %v263_v18 = vadd.f32 0.5, %v255_v15 }
 0x23f   :  { %v262_v19 = vadd.f32 0.5, %v254_v17 }
 0x240   :  { %v274_v21 = vmul.f32 0.0, %v263_v18 }
 0x244   :  { %v239_v16 = vpop.f32.mrf.mxu1 }
 0x245   :  { %1290 = vtanh.f32 %v239_v16 }
 0x246   :  { %1292 = vtanh.f32 %v236_v8 }
 0x24b   :  { %v1291_v20 = vpop.eup %1290 }
 0x24c   :  { %v275_v22 = vmul.f32 %v1291_v20, %v262_v19  ;;  %v1293_v23 = vpop.eup %1292 }
 0x24d   :  { %v256_v25 = vmul.f32 0.5, %v1293_v23 }
 0x24e   :  { %v1677_v24 = vadd.f32 %v275_v22, %v274_v21 }
 0x24f   :  { %v264_v26 = vadd.f32 0.5, %v256_v25 }
 0x250   :  { %1294 = vtanh.f32 %v1677_v24 }
 0x256   :  { %v1295_v27 = vpop.eup %1294 }
 0x257   :  { %v1680_v28 = vmul.f32 %v1295_v27, %v264_v26 }
 0x259   :  { %288 = vrot.lane.b32.xlu2 %v1680_v28, %s1481_s22  ;;  %294 = vrot.lane.b32.xlu0 %v1680_v28, %s1480_s21 }
 0x261   :  { %286 = vrot.lane.b32.xlu0 %v285_v7, %s1481_s22 }
 0x2ac   :  { %v293_v30 = vpop.permute.xlu1 %292 }
 0x2b3   :  { %v1695_v31 = vpop.permute.xlu2 %288 }
 0x2cb   :  { %v1687_v29 = vpop.permute.xlu0 %294 }
 0x2cc   :  { %1089 = vmatpush.msk.msrb.mxu2 %vm1236_vm1, %v1687_v29 }
 0x2ce   :  { %1091 = vmatpush.msk.msrb.mxu2 %vm1236_vm1, %v293_v30 }
 0x2d0   :  { %310 = vmatpush.msrb.mxu2 %v1680_v28 }
 0x2d2   :  { %311 = vmatpush.msrb.mxu2 %v285_v7 }
 0x2d3   :  { %v287_v32 = vpop.permute.xlu0 %286 }
 0x2d4   :  { %1093 = vmatpush.msk.msrb.mxu2 %vm1237_vm2, %v1695_v31 }
 0x2d6   :  { %1095 = vmatpush.msk.msrb.mxu2 %vm1237_vm2, %v287_v32 }
 0x2d7   :  { %1096 = vmatmul.msk.f32.vlgmr.msrb.gmra.mxu2 %vm110_vm3, %v1578_v11 }
 0x2df   :  { %1097 = vmatmul.msk.f32.gmra.mxu2 %vm110_vm3, %v1602_v13 }
 0x2e7   :  { %1098 = vmatmul.msk.f32.gmra.mxu2 %vm110_vm3, %v1583_v12 }
 0x2ef   :  { %1099 = vmatmul.msk.f32.gmra.mxu2 %vm110_vm3, %v1607_v14 }
 0x2f7   :  { %1100 = vmatmul.msk.f32.gmra.mxu2 %vm110_vm3, %v1623_v37 }
 0x2ff   :  { %1101 = vmatmul.msk.f32.gmra.mxu2 %vm110_vm3, %v1638_v39 }
 0x307   :  { %1102 = vmatmul.msk.f32.gmra.mxu2 %vm110_vm3, %v1647_v40 }
 0x30f   :  { %1103 = vmatmul.msk.f32.gmra.mxu2 %vm110_vm3, %v1656_v41 }
 0x35a   :  { %v315_v33 = vpop.f32.mrf.mxu2 }
 0x362   :  { %v318_v34 = vpop.f32.mrf.mxu2 }
 0x363   :  { %1296 = vtanh.f32 %v318_v34 }
 0x364   :  { %1298 = vtanh.f32 %v315_v33 }
 0x369   :  { %v1297_v36 = vpop.eup %1296 }
 0x36a   :  { %v321_v35 = vpop.f32.mrf.mxu2  ;;  %v1299_v38 = vpop.eup %1298  ;;  %v348_v42 = vmul.f32 0.5, %v1297_v36 }
 0x36b   :  { %v347_v44 = vmul.f32 0.5, %v1299_v38 }
 0x36c   :  { %v356_v45 = vadd.f32 0.5, %v348_v42 }
 0x36d   :  { %v355_v46 = vadd.f32 0.5, %v347_v44 }
 0x36e   :  { %v376_v48 = vmul.f32 %v356_v45, %v1670_v61 }
 0x372   :  { %v324_v43 = vpop.f32.mrf.mxu2 }
 0x373   :  { %1300 = vtanh.f32 %v324_v43 }
 0x374   :  { %1302 = vtanh.f32 %v321_v35 }
 0x379   :  { %v1301_v47 = vpop.eup %1300 }
 0x37a   :  { %v377_v49 = vmul.f32 %v1301_v47, %v355_v46  ;;  %v327_v50 = vpop.f32.mrf.mxu2  ;;  %v1303_v51 = vpop.eup %1302 }
 0x37b   :  { %v349_v53 = vmul.f32 0.5, %v1303_v51 }
 0x37c   :  { %v1719_v52 = vadd.f32 %v377_v49, %v376_v48 }
 0x37d   :  { %v357_v55 = vadd.f32 0.5, %v349_v53 }
 0x37e   :  { %1304 = vtanh.f32 %v1719_v52 }
 0x382   :  { %v330_v54 = vpop.f32.mrf.mxu2 }
 0x383   :  { %1306 = vtanh.f32 %v330_v54 }
 0x384   :  { %v1305_v57 = vpop.eup %1304  ;;  %1308 = vtanh.f32 %v327_v50  ;;  %v478_v50 = vperm.slane %v1515_v0, 4 }
 0x385   :  { %v380_v58 = vmul.f32 %v1305_v57, %v357_v55 }
 0x387   :  { %v382_v59 = vsel %vm48_vm0, %v381_v56, %v380_v58 }
 0x388   :  { %389 = vrot.lane.b32.xlu2 %v382_v59, %s1480_s21 }
 0x389   :  { %v1307_v61 = vpop.eup %1306 }
 0x38a   :  { %v333_v60 = vpop.f32.mrf.mxu2  ;;  %v1309_v62 = vpop.eup %1308  ;;  %v352_v63 = vmul.f32 0.5, %v1307_v61 }
 0x38b   :  { %v351_v2 = vmul.f32 0.5, %v1309_v62 }
 0x38c   :  { %v360_v4 = vadd.f32 0.5, %v352_v63 }
 0x38d   :  { %v359_v5 = vadd.f32 0.5, %v351_v2 }
 0x38e   :  { %v371_v8 = vmul.f32 %v360_v4, %v1677_v24 }
 0x392   :  { %v336_v1 = vpop.f32.mrf.mxu2 }
 0x393   :  { %1310 = vtanh.f32 %v336_v1 }
 0x394   :  { %1312 = vtanh.f32 %v333_v60 }
 0x399   :  { %v1311_v7 = vpop.eup %1310 }
 0x39a   :  { %v372_v9 = vmul.f32 %v1311_v7, %v359_v5  ;;  %v1313_v10 = vpop.eup %1312 }
 0x39b   :  { %v353_v16 = vmul.f32 0.5, %v1313_v10 }
 0x39c   :  { %v1727_v15 = vadd.f32 %v372_v9, %v371_v8 }
 0x39d   :  { %v361_v17 = vadd.f32 0.5, %v353_v16 }
 0x39e   :  { %1314 = vtanh.f32 %v1727_v15 }
 0x3a4   :  { %v1315_v18 = vpop.eup %1314 }
 0x3a5   :  { %v1730_v19 = vmul.f32 %v1315_v18, %v361_v17 }
 0x3a7   :  { %385 = vrot.lane.b32.xlu0 %v1730_v19, %s1481_s22  ;;  %391 = vrot.lane.b32.xlu1 %v1730_v19, %s1480_s21 }
 0x3af   :  { %383 = vrot.lane.b32.xlu1 %v382_v59, %s1481_s22 }
 0x3e2   :  { %v390_v21 = vpop.permute.xlu2 %389 }
 0x419   :  { %v1737_v20 = vpop.permute.xlu1 %391  ;;  %v1745_v22 = vpop.permute.xlu0 %385 }
 0x41a   :  { %1105 = vmatpush.msk.msrb.mxu3 %vm1236_vm1, %v1737_v20 }
 0x41c   :  { %1107 = vmatpush.msk.msrb.mxu3 %vm1236_vm1, %v390_v21 }
 0x41e   :  { %407 = vmatpush.msrb.mxu3 %v1730_v19 }
 0x420   :  { %408 = vmatpush.msrb.mxu3 %v382_v59 }
 0x421   :  { %v384_v23 = vpop.permute.xlu1 %383 }
 0x422   :  { %1109 = vmatpush.msk.msrb.mxu3 %vm1237_vm2, %v1745_v22 }
 0x424   :  { %1111 = vmatpush.msk.msrb.mxu3 %vm1237_vm2, %v384_v23 }
 0x425   :  { %1112 = vmatmul.msk.f32.vlgmr.msrb.gmra.mxu3 %vm110_vm3, %v1578_v11 }
 0x42d   :  { %1113 = vmatmul.msk.f32.gmra.mxu3 %vm110_vm3, %v1602_v13 }
 0x435   :  { %1114 = vmatmul.msk.f32.gmra.mxu3 %vm110_vm3, %v1583_v12 }
 0x43d   :  { %1115 = vmatmul.msk.f32.gmra.mxu3 %vm110_vm3, %v1607_v14 }
 0x445   :  { %1116 = vmatmul.msk.f32.gmra.mxu3 %vm110_vm3, %v1623_v37 }
 0x44d   :  { %1117 = vmatmul.msk.f32.gmra.mxu3 %vm110_vm3, %v1638_v39 }
 0x455   :  { %1118 = vmatmul.msk.f32.gmra.mxu3 %vm110_vm3, %v1647_v40 }
 0x45d   :  { %1119 = vmatmul.msk.f32.gmra.mxu3 %vm110_vm3, %v1656_v41 }
 0x4a8   :  { %v412_v24 = vpop.f32.mrf.mxu3 }
 0x4b0   :  { %v415_v25 = vpop.f32.mrf.mxu3 }
 0x4b1   :  { %1316 = vtanh.f32 %v415_v25 }
 0x4b2   :  { %1318 = vtanh.f32 %v412_v24 }
 0x4b7   :  { %v1317_v27 = vpop.eup %1316 }
 0x4b8   :  { %v418_v26 = vpop.f32.mrf.mxu3  ;;  %v1319_v30 = vpop.eup %1318  ;;  %v445_v32 = vmul.f32 0.5, %v1317_v27 }
 0x4b9   :  { %v444_v34 = vmul.f32 0.5, %v1319_v30 }
 0x4ba   :  { %v453_v35 = vadd.f32 0.5, %v445_v32 }
 0x4bb   :  { %v452_v36 = vadd.f32 0.5, %v444_v34 }
 0x4bc   :  { %v473_v42 = vmul.f32 %v453_v35, %v1719_v52 }
 0x4c0   :  { %v421_v33 = vpop.f32.mrf.mxu3 }
 0x4c1   :  { %1320 = vtanh.f32 %v421_v33 }
 0x4c2   :  { %1322 = vtanh.f32 %v418_v26 }
 0x4c7   :  { %v1321_v38 = vpop.eup %1320 }
 0x4c8   :  { %v474_v43 = vmul.f32 %v1321_v38, %v452_v36  ;;  %v424_v44 = vpop.f32.mrf.mxu3  ;;  %v1323_v45 = vpop.eup %1322 }
 0x4c9   :  { %v446_v47 = vmul.f32 0.5, %v1323_v45 }
 0x4ca   :  { %v1769_v46 = vadd.f32 %v474_v43, %v473_v42 }
 0x4cb   :  { %v454_v49 = vadd.f32 0.5, %v446_v47 }
 0x4cc   :  { %1324 = vtanh.f32 %v1769_v46 }
 0x4d0   :  { %v427_v48 = vpop.f32.mrf.mxu3 }
 0x4d1   :  { %1326 = vtanh.f32 %v427_v48  ;;  %v575_v48 = vperm.slane %v1515_v0, 5 }
 0x4d2   :  { %v1325_v51 = vpop.eup %1324  ;;  %1328 = vtanh.f32 %v424_v44 }
 0x4d3   :  { %v477_v53 = vmul.f32 %v1325_v51, %v454_v49 }
 0x4d5   :  { %v479_v54 = vsel %vm48_vm0, %v478_v50, %v477_v53 }
 0x4d6   :  { %486 = vrot.lane.b32.xlu0 %v479_v54, %s1480_s21 }
 0x4d7   :  { %v1327_v55 = vpop.eup %1326 }
 0x4d8   :  { %v430_v52 = vpop.f32.mrf.mxu3  ;;  %v1329_v56 = vpop.eup %1328  ;;  %v449_v57 = vmul.f32 0.5, %v1327_v55 }
 0x4d9   :  { %v448_v59 = vmul.f32 0.5, %v1329_v56 }
 0x4da   :  { %v457_v60 = vadd.f32 0.5, %v449_v57 }
 0x4db   :  { %v456_v61 = vadd.f32 0.5, %v448_v59 }
 0x4dc   :  { %v468_v63 = vmul.f32 %v457_v60, %v1727_v15 }
 0x4e0   :  { %v433_v58 = vpop.f32.mrf.mxu3 }
 0x4e1   :  { %1330 = vtanh.f32 %v433_v58 }
 0x4e2   :  { %1332 = vtanh.f32 %v430_v52 }
 0x4e7   :  { %v1331_v62 = vpop.eup %1330 }
 0x4e8   :  { %v469_v1 = vmul.f32 %v1331_v62, %v456_v61  ;;  %v1333_v2 = vpop.eup %1332 }
 0x4e9   :  { %v450_v5 = vmul.f32 0.5, %v1333_v2 }
 0x4ea   :  { %v1777_v4 = vadd.f32 %v469_v1, %v468_v63 }
 0x4eb   :  { %v458_v7 = vadd.f32 0.5, %v450_v5 }
 0x4ec   :  { %1334 = vtanh.f32 %v1777_v4 }
 0x4f2   :  { %v1335_v8 = vpop.eup %1334 }
 0x4f3   :  { %v1780_v9 = vmul.f32 %v1335_v8, %v458_v7 }
 0x4f5   :  { %482 = vrot.lane.b32.xlu1 %v1780_v9, %s1481_s22  ;;  %488 = vrot.lane.b32.xlu2 %v1780_v9, %s1480_s21 }
 0x4fd   :  { %480 = vrot.lane.b32.xlu2 %v479_v54, %s1481_s22 }
 0x548   :  { %v487_v15 = vpop.permute.xlu0 %486 }
 0x54f   :  { %v1787_v10 = vpop.permute.xlu2 %488 }
 0x550   :  { %1121 = vmatpush.msk.msrb.mxu0 %vm1236_vm1, %v1787_v10 }
 0x552   :  { %1123 = vmatpush.msk.msrb.mxu0 %vm1236_vm1, %v487_v15 }
 0x554   :  { %504 = vmatpush.msrb.mxu0 %v1780_v9 }
 0x556   :  { %505 = vmatpush.msrb.mxu0 %v479_v54 }
 0x557   :  { %v481_v17 = vpop.permute.xlu2 %480 }
 0x567   :  { %v1795_v16 = vpop.permute.xlu1 %482 }
 0x568   :  { %1125 = vmatpush.msk.msrb.mxu0 %vm1237_vm2, %v1795_v16 }
 0x56a   :  { %1127 = vmatpush.msk.msrb.mxu0 %vm1237_vm2, %v481_v17 }
 0x56b   :  { %1128 = vmatmul.msk.f32.vlgmr.msrb.gmra.mxu0 %vm110_vm3, %v1578_v11 }
 0x573   :  { %1129 = vmatmul.msk.f32.gmra.mxu0 %vm110_vm3, %v1602_v13 }
 0x57b   :  { %1130 = vmatmul.msk.f32.gmra.mxu0 %vm110_vm3, %v1583_v12 }
 0x583   :  { %1131 = vmatmul.msk.f32.gmra.mxu0 %vm110_vm3, %v1607_v14 }
 0x58b   :  { %1132 = vmatmul.msk.f32.gmra.mxu0 %vm110_vm3, %v1623_v37 }
 0x593   :  { %1133 = vmatmul.msk.f32.gmra.mxu0 %vm110_vm3, %v1638_v39 }
 0x59b   :  { %1134 = vmatmul.msk.f32.gmra.mxu0 %vm110_vm3, %v1647_v40 }
 0x5a3   :  { %1135 = vmatmul.msk.f32.gmra.mxu0 %vm110_vm3, %v1656_v41 }
 0x5e8   :  { %v509_v18 = vpop.f32.mrf.mxu0 }
 0x5f0   :  { %v512_v21 = vpop.f32.mrf.mxu0 }
 0x5f1   :  { %1336 = vtanh.f32 %v512_v21 }
 0x5f2   :  { %1338 = vtanh.f32 %v509_v18 }
 0x5f7   :  { %v1337_v24 = vpop.eup %1336 }
 0x5f8   :  { %v515_v23 = vpop.f32.mrf.mxu0  ;;  %v1339_v25 = vpop.eup %1338  ;;  %v542_v26 = vmul.f32 0.5, %v1337_v24 }
 0x5f9   :  { %v541_v30 = vmul.f32 0.5, %v1339_v25 }
 0x5fa   :  { %v550_v32 = vadd.f32 0.5, %v542_v26 }
 0x5fb   :  { %v549_v33 = vadd.f32 0.5, %v541_v30 }
 0x5fc   :  { %v570_v35 = vmul.f32 %v550_v32, %v1769_v46 }
 0x600   :  { %v518_v27 = vpop.f32.mrf.mxu0 }
 0x601   :  { %1340 = vtanh.f32 %v518_v27 }
 0x602   :  { %1342 = vtanh.f32 %v515_v23 }
 0x607   :  { %v1341_v34 = vpop.eup %1340 }
 0x608   :  { %v571_v36 = vmul.f32 %v1341_v34, %v549_v33  ;;  %v521_v38 = vpop.f32.mrf.mxu0  ;;  %v1343_v42 = vpop.eup %1342 }
 0x609   :  { %v543_v44 = vmul.f32 0.5, %v1343_v42 }
 0x60a   :  { %v1819_v43 = vadd.f32 %v571_v36, %v570_v35 }
 0x60b   :  { %v551_v47 = vadd.f32 0.5, %v543_v44 }
 0x60c   :  { %1344 = vtanh.f32 %v1819_v43 }
 0x610   :  { %v524_v45 = vpop.f32.mrf.mxu0 }
 0x611   :  { %1346 = vtanh.f32 %v524_v45 }
 0x612   :  { %v1345_v49 = vpop.eup %1344  ;;  %1348 = vtanh.f32 %v521_v38 }
 0x613   :  { %v574_v50 = vmul.f32 %v1345_v49, %v551_v47  ;;  %v672_v49 = vperm.slane %v1515_v0, 6 }
 0x615   :  { %v576_v51 = vsel %vm48_vm0, %v575_v48, %v574_v50 }
 0x616   :  { %583 = vrot.lane.b32.xlu1 %v576_v51, %s1480_s21 }
 0x617   :  { %v1347_v53 = vpop.eup %1346 }
 0x618   :  { %v527_v46 = vpop.f32.mrf.mxu0  ;;  %v1349_v54 = vpop.eup %1348  ;;  %v546_v52 = vmul.f32 0.5, %v1347_v53 }
 0x619   :  { %v545_v56 = vmul.f32 0.5, %v1349_v54 }
 0x61a   :  { %v554_v57 = vadd.f32 0.5, %v546_v52 }
 0x61b   :  { %v553_v58 = vadd.f32 0.5, %v545_v56 }
 0x61c   :  { %v565_v60 = vmul.f32 %v554_v57, %v1777_v4 }
 0x620   :  { %v530_v55 = vpop.f32.mrf.mxu0 }
 0x621   :  { %1350 = vtanh.f32 %v530_v55 }
 0x622   :  { %1352 = vtanh.f32 %v527_v46 }
 0x627   :  { %v1351_v59 = vpop.eup %1350 }
 0x628   :  { %v566_v61 = vmul.f32 %v1351_v59, %v553_v58  ;;  %v1353_v62 = vpop.eup %1352 }
 0x629   :  { %v547_v1 = vmul.f32 0.5, %v1353_v62 }
 0x62a   :  { %v1827_v63 = vadd.f32 %v566_v61, %v565_v60 }
 0x62b   :  { %v555_v2 = vadd.f32 0.5, %v547_v1 }
 0x62c   :  { %1354 = vtanh.f32 %v1827_v63 }
 0x632   :  { %v1355_v5 = vpop.eup %1354 }
 0x633   :  { %v1830_v7 = vmul.f32 %v1355_v5, %v555_v2 }
 0x635   :  { %579 = vrot.lane.b32.xlu2 %v1830_v7, %s1481_s22  ;;  %585 = vrot.lane.b32.xlu0 %v1830_v7, %s1480_s21 }
 0x63d   :  { %577 = vrot.lane.b32.xlu0 %v576_v51, %s1481_s22 }
 0x688   :  { %v584_v8 = vpop.permute.xlu1 %583 }
 0x68f   :  { %v1845_v15 = vpop.permute.xlu2 %579 }
 0x6a7   :  { %v1837_v4 = vpop.permute.xlu0 %585 }
 0x6a8   :  { %1137 = vmatpush.msk.msra.mxu1 %vm1236_vm1, %v1837_v4 }
 0x6aa   :  { %1139 = vmatpush.msk.msra.mxu1 %vm1236_vm1, %v584_v8 }
 0x6ac   :  { %601 = vmatpush.msra.mxu1 %v1830_v7 }
 0x6ae   :  { %602 = vmatpush.msra.mxu1 %v576_v51 }
 0x6af   :  { %v578_v17 = vpop.permute.xlu0 %577 }
 0x6b0   :  { %1141 = vmatpush.msk.msra.mxu1 %vm1237_vm2, %v1845_v15 }
 0x6b2   :  { %1143 = vmatpush.msk.msra.mxu1 %vm1237_vm2, %v578_v17 }
 0x6b3   :  { %1144 = vmatmul.msk.f32.vlgmr.msra.gmra.mxu1 %vm110_vm3, %v1578_v11 }
 0x6bb   :  { %1145 = vmatmul.msk.f32.gmra.mxu1 %vm110_vm3, %v1602_v13 }
 0x6c3   :  { %1146 = vmatmul.msk.f32.gmra.mxu1 %vm110_vm3, %v1583_v12 }
 0x6cb   :  { %1147 = vmatmul.msk.f32.gmra.mxu1 %vm110_vm3, %v1607_v14 }
 0x6d3   :  { %1148 = vmatmul.msk.f32.gmra.mxu1 %vm110_vm3, %v1623_v37 }
 0x6db   :  { %1149 = vmatmul.msk.f32.gmra.mxu1 %vm110_vm3, %v1638_v39 }
 0x6e3   :  { %1150 = vmatmul.msk.f32.gmra.mxu1 %vm110_vm3, %v1647_v40 }
 0x6eb   :  { %1151 = vmatmul.msk.f32.gmra.mxu1 %vm110_vm3, %v1656_v41 }
 0x730   :  { %v606_v18 = vpop.f32.mrf.mxu1 }
 0x738   :  { %v609_v21 = vpop.f32.mrf.mxu1 }
 0x739   :  { %1356 = vtanh.f32 %v609_v21 }
 0x73a   :  { %1358 = vtanh.f32 %v606_v18 }
 0x73f   :  { %v1357_v24 = vpop.eup %1356 }
 0x740   :  { %v612_v23 = vpop.f32.mrf.mxu1  ;;  %v1359_v25 = vpop.eup %1358  ;;  %v639_v26 = vmul.f32 0.5, %v1357_v24 }
 0x741   :  { %v638_v30 = vmul.f32 0.5, %v1359_v25 }
 0x742   :  { %v647_v32 = vadd.f32 0.5, %v639_v26 }
 0x743   :  { %v646_v33 = vadd.f32 0.5, %v638_v30 }
 0x744   :  { %v667_v35 = vmul.f32 %v647_v32, %v1819_v43 }
 0x748   :  { %v615_v27 = vpop.f32.mrf.mxu1 }
 0x749   :  { %1360 = vtanh.f32 %v615_v27 }
 0x74a   :  { %1362 = vtanh.f32 %v612_v23 }
 0x74f   :  { %v1361_v34 = vpop.eup %1360 }
 0x750   :  { %v668_v36 = vmul.f32 %v1361_v34, %v646_v33  ;;  %v618_v38 = vpop.f32.mrf.mxu1  ;;  %v1363_v42 = vpop.eup %1362 }
 0x751   :  { %v640_v45 = vmul.f32 0.5, %v1363_v42 }
 0x752   :  { %v1869_v44 = vadd.f32 %v668_v36, %v667_v35 }
 0x753   :  { %v648_v48 = vadd.f32 0.5, %v640_v45 }
 0x754   :  { %1364 = vtanh.f32 %v1869_v44 }
 0x758   :  { %v621_v47 = vpop.f32.mrf.mxu1 }
 0x759   :  { %1366 = vtanh.f32 %v621_v47 }
 0x75a   :  { %v1365_v50 = vpop.eup %1364  ;;  %1368 = vtanh.f32 %v618_v38 }
 0x75b   :  { %v671_v51 = vmul.f32 %v1365_v50, %v648_v48 }
 0x75d   :  { %v673_v46 = vsel %vm48_vm0, %v672_v49, %v671_v51 }
 0x75e   :  { %680 = vrot.lane.b32.xlu2 %v673_v46, %s1480_s21 }
 0x75f   :  { %v1367_v53 = vpop.eup %1366 }
 0x760   :  { %v624_v43 = vpop.f32.mrf.mxu1  ;;  %v1369_v54 = vpop.eup %1368  ;;  %v643_v52 = vmul.f32 0.5, %v1367_v53 }
 0x761   :  { %v642_v56 = vmul.f32 0.5, %v1369_v54 }
 0x762   :  { %v651_v57 = vadd.f32 0.5, %v643_v52 }
 0x763   :  { %v650_v58 = vadd.f32 0.5, %v642_v56 }
 0x764   :  { %v662_v60 = vmul.f32 %v651_v57, %v1827_v63 }
 0x768   :  { %v627_v55 = vpop.f32.mrf.mxu1 }
 0x769   :  { %1370 = vtanh.f32 %v627_v55 }
 0x76a   :  { %1372 = vtanh.f32 %v624_v43  ;;  %v769_v43 = vperm.slane %v1515_v0, 7 }
 0x76f   :  { %v1371_v59 = vpop.eup %1370 }
 0x770   :  { %v663_v61 = vmul.f32 %v1371_v59, %v650_v58  ;;  %v1373_v62 = vpop.eup %1372 }
 0x771   :  { %v644_v2 = vmul.f32 0.5, %v1373_v62 }
 0x772   :  { %v1877_v1 = vadd.f32 %v663_v61, %v662_v60 }
 0x773   :  { %v652_v5 = vadd.f32 0.5, %v644_v2 }
 0x774   :  { %1374 = vtanh.f32 %v1877_v1 }
 0x77a   :  { %v1375_v8 = vpop.eup %1374 }
 0x77b   :  { %v1880_v17 = vmul.f32 %v1375_v8, %v652_v5 }
 0x77d   :  { %676 = vrot.lane.b32.xlu0 %v1880_v17, %s1481_s22  ;;  %682 = vrot.lane.b32.xlu1 %v1880_v17, %s1480_s21 }
 0x785   :  { %674 = vrot.lane.b32.xlu1 %v673_v46, %s1481_s22 }
 0x7b8   :  { %v681_v18 = vpop.permute.xlu2 %680 }
 0x7ef   :  { %v1887_v63 = vpop.permute.xlu1 %682  ;;  %v1895_v21 = vpop.permute.xlu0 %676 }
 0x7f0   :  { %1153 = vmatpush.msk.msra.mxu2 %vm1236_vm1, %v1887_v63 }
 0x7f2   :  { %1155 = vmatpush.msk.msra.mxu2 %vm1236_vm1, %v681_v18 }
 0x7f4   :  { %698 = vmatpush.msra.mxu2 %v1880_v17 }
 0x7f6   :  { %699 = vmatpush.msra.mxu2 %v673_v46 }
 0x7f7   :  { %v675_v23 = vpop.permute.xlu1 %674 }
 0x7f8   :  { %1157 = vmatpush.msk.msra.mxu2 %vm1237_vm2, %v1895_v21 }
 0x7fa   :  { %1159 = vmatpush.msk.msra.mxu2 %vm1237_vm2, %v675_v23 }
 0x7fb   :  { %1160 = vmatmul.msk.f32.vlgmr.msra.gmra.mxu2 %vm110_vm3, %v1578_v11 }
 0x803   :  { %1161 = vmatmul.msk.f32.gmra.mxu2 %vm110_vm3, %v1602_v13 }
 0x80b   :  { %1162 = vmatmul.msk.f32.gmra.mxu2 %vm110_vm3, %v1583_v12 }
 0x813   :  { %1163 = vmatmul.msk.f32.gmra.mxu2 %vm110_vm3, %v1607_v14 }
 0x81b   :  { %1164 = vmatmul.msk.f32.gmra.mxu2 %vm110_vm3, %v1623_v37 }
 0x823   :  { %1165 = vmatmul.msk.f32.gmra.mxu2 %vm110_vm3, %v1638_v39 }
 0x82b   :  { %1166 = vmatmul.msk.f32.gmra.mxu2 %vm110_vm3, %v1647_v40 }
 0x833   :  { %1167 = vmatmul.msk.f32.gmra.mxu2 %vm110_vm3, %v1656_v41 }
 0x87e   :  { %v703_v24 = vpop.f32.mrf.mxu2 }
 0x886   :  { %v706_v25 = vpop.f32.mrf.mxu2 }
 0x887   :  { %1376 = vtanh.f32 %v706_v25 }
 0x888   :  { %1378 = vtanh.f32 %v703_v24 }
 0x88d   :  { %v1377_v27 = vpop.eup %1376 }
 0x88e   :  { %v709_v26 = vpop.f32.mrf.mxu2  ;;  %v1379_v30 = vpop.eup %1378  ;;  %v736_v32 = vmul.f32 0.5, %v1377_v27 }
 0x88f   :  { %v735_v34 = vmul.f32 0.5, %v1379_v30 }
 0x890   :  { %v744_v35 = vadd.f32 0.5, %v736_v32 }
 0x891   :  { %v743_v36 = vadd.f32 0.5, %v735_v34 }
 0x892   :  { %v764_v42 = vmul.f32 %v744_v35, %v1869_v44 }
 0x896   :  { %v712_v33 = vpop.f32.mrf.mxu2 }
 0x897   :  { %1380 = vtanh.f32 %v712_v33 }
 0x898   :  { %1382 = vtanh.f32 %v709_v26 }
 0x89d   :  { %v1381_v38 = vpop.eup %1380 }
 0x89e   :  { %v765_v45 = vmul.f32 %v1381_v38, %v743_v36  ;;  %v715_v47 = vpop.f32.mrf.mxu2  ;;  %v1383_v48 = vpop.eup %1382 }
 0x89f   :  { %v737_v50 = vmul.f32 0.5, %v1383_v48 }
 0x8a0   :  { %v1919_v49 = vadd.f32 %v765_v45, %v764_v42 }
 0x8a1   :  { %v745_v46 = vadd.f32 0.5, %v737_v50 }
 0x8a2   :  { %1384 = vtanh.f32 %v1919_v49 }
 0x8a6   :  { %v718_v51 = vpop.f32.mrf.mxu2 }
 0x8a7   :  { %1386 = vtanh.f32 %v718_v51 }
 0x8a8   :  { %v1385_v53 = vpop.eup %1384  ;;  %1388 = vtanh.f32 %v715_v47 }
 0x8a9   :  { %v768_v54 = vmul.f32 %v1385_v53, %v745_v46 }
 0x8ab   :  { %v770_v52 = vsel %vm48_vm0, %v769_v43, %v768_v54 }
 0x8ac   :  { %777 = vrot.lane.b32.xlu0 %v770_v52, %s1480_s21 }
 0x8ad   :  { %v1387_v55 = vpop.eup %1386 }
 0x8ae   :  { %v721_v44 = vpop.f32.mrf.mxu2  ;;  %v1389_v56 = vpop.eup %1388  ;;  %v740_v57 = vmul.f32 0.5, %v1387_v55 }
 0x8af   :  { %v739_v59 = vmul.f32 0.5, %v1389_v56 }
 0x8b0   :  { %v748_v60 = vadd.f32 0.5, %v740_v57 }
 0x8b1   :  { %v747_v61 = vadd.f32 0.5, %v739_v59 }
 0x8b2   :  { %v759_v62 = vmul.f32 %v748_v60, %v1877_v1 }
 0x8b6   :  { %v724_v58 = vpop.f32.mrf.mxu2 }
 0x8b7   :  { %1390 = vtanh.f32 %v724_v58 }
 0x8b8   :  { %1392 = vtanh.f32 %v721_v44 }
 0x8bd   :  { %v1391_v0 = vpop.eup %1390 }
 0x8be   :  { %v760_v2 = vmul.f32 %v1391_v0, %v747_v61  ;;  %v1393_v5 = vpop.eup %1392 }
 0x8bf   :  { %v741_v18 = vmul.f32 0.5, %v1393_v5 }
 0x8c0   :  { %v1927_v8 = vadd.f32 %v760_v2, %v759_v62 }
 0x8c1   :  { %v749_v23 = vadd.f32 0.5, %v741_v18 }
 0x8c2   :  { %1394 = vtanh.f32 %v1927_v8 }
 0x8c8   :  { %v1395_v24 = vpop.eup %1394 }
 0x8c9   :  { %v1930_v25 = vmul.f32 %v1395_v24, %v749_v23 }
 0x8cb   :  { %773 = vrot.lane.b32.xlu1 %v1930_v25, %s1481_s22  ;;  %779 = vrot.lane.b32.xlu2 %v1930_v25, %s1480_s21 }
 0x8d3   :  { %771 = vrot.lane.b32.xlu2 %v770_v52, %s1481_s22 }
 0x91e   :  { %v778_v26 = vpop.permute.xlu0 %777 }
 0x925   :  { %v1937_v1 = vpop.permute.xlu2 %779 }
 0x926   :  { %1169 = vmatpush.msk.msra.mxu3 %vm1236_vm1, %v1937_v1 }
 0x928   :  { %1171 = vmatpush.msk.msra.mxu3 %vm1236_vm1, %v778_v26 }
 0x92a   :  { %795 = vmatpush.msra.mxu3 %v1930_v25 }
 0x92c   :  { %796 = vmatpush.msra.mxu3 %v770_v52 }
 0x92d   :  { %v772_v30 = vpop.permute.xlu2 %771 }
 0x93d   :  { %v1945_v27 = vpop.permute.xlu1 %773 }
 0x93e   :  { %1173 = vmatpush.msk.msra.mxu3 %vm1237_vm2, %v1945_v27 }
 0x940   :  { %1175 = vmatpush.msk.msra.mxu3 %vm1237_vm2, %v772_v30  ;;  %v1430_v30 = vld [vmem:[%s2084_s1] sm:$0xff] }
 0x941   :  { %1176 = vmatmul.msk.f32.vlgmr.msra.gmra.mxu3 %vm110_vm3, %v1578_v11 }
 0x949   :  { %1177 = vmatmul.msk.f32.gmra.mxu3 %vm110_vm3, %v1602_v13 }
 0x951   :  { %1178 = vmatmul.msk.f32.gmra.mxu3 %vm110_vm3, %v1583_v12 }
 0x959   :  { %1179 = vmatmul.msk.f32.gmra.mxu3 %vm110_vm3, %v1607_v14 }
 0x961   :  { %1180 = vmatmul.msk.f32.gmra.mxu3 %vm110_vm3, %v1623_v37 }
 0x969   :  { %1181 = vmatmul.msk.f32.gmra.mxu3 %vm110_vm3, %v1638_v39 }
 0x971   :  { %1182 = vmatmul.msk.f32.gmra.mxu3 %vm110_vm3, %v1647_v40 }
 0x979   :  { %1183 = vmatmul.msk.f32.gmra.mxu3 %vm110_vm3, %v1656_v41 }
 0x9c4   :  { %v800_v11 = vpop.f32.mrf.mxu3 }
 0x9cc   :  { %v803_v13 = vpop.f32.mrf.mxu3 }
 0x9cd   :  { %1396 = vtanh.f32 %v803_v13  ;;  %v1433_v13 = vld [vmem:[%s2084_s1 + $0x18] sm:$0xff] }
 0x9ce   :  { %1398 = vtanh.f32 %v800_v11  ;;  %v1432_v11 = vld [vmem:[%s2084_s1 + $0x10] sm:$0xff] }
 0x9d3   :  { %v1397_v12 = vpop.eup %1396 }
 0x9d4   :  { %v806_v32 = vpop.f32.mrf.mxu3  ;;  %v1399_v33 = vpop.eup %1398  ;;  %v833_v14 = vmul.f32 0.5, %v1397_v12  ;;  %v1435_v12 = vld [vmem:[%s2084_s1 + $0x28] sm:$0xff] }
 0x9d5   :  { %v832_v37 = vmul.f32 0.5, %v1399_v33  ;;  %v1436_v33 = vld [vmem:[%s2084_s1 + $0x30] sm:$0xff] }
 0x9d6   :  { %v841_v35 = vadd.f32 0.5, %v833_v14  ;;  %v1437_v14 = vld [vmem:[%s2084_s1 + $0x38] sm:$0xff] }
 0x9d7   :  { %v840_v39 = vadd.f32 0.5, %v832_v37 }
 0x9d8   :  { %v861_v40 = vmul.f32 %v841_v35, %v1919_v49 }
 0x9dc   :  { %v809_v34 = vpop.f32.mrf.mxu3 }
 0x9dd   :  { %1400 = vtanh.f32 %v809_v34 }
 0x9de   :  { %1402 = vtanh.f32 %v806_v32  ;;  %v1434_v32 = vld [vmem:[%s2084_s1 + $0x20] sm:$0xff] }
 0x9e3   :  { %v1401_v36 = vpop.eup %1400 }
 0x9e4   :  { %v862_v38 = vmul.f32 %v1401_v36, %v840_v39  ;;  %v812_v42 = vpop.f32.mrf.mxu3  ;;  %v1403_v41 = vpop.eup %1402 }
 0x9e5   :  { %v834_v47 = vmul.f32 0.5, %v1403_v41 }
 0x9e6   :  { %v863_v45 = vadd.f32 %v862_v38, %v861_v40 }
 0x9e7   :  { %v842_v50 = vadd.f32 0.5, %v834_v47 }
 0x9e8   :  { %1404 = vtanh.f32 %v863_v45 }
 0x9ec   :  { %v815_v48 = vpop.f32.mrf.mxu3 }
 0x9ed   :  { %1406 = vtanh.f32 %v815_v48 }
 0x9ee   :  { %v1405_v51 = vpop.eup %1404  ;;  %1408 = vtanh.f32 %v812_v42 }
 0x9ef   :  { %v865_v46 = vmul.f32 %v1405_v51, %v842_v50 }
 0x9f1   :  { %v866_v43 = vsel %vm48_vm0, 0.0, %v865_v46 }
 0x9f2   :  { %873 = vrot.lane.b32.xlu1 %v866_v43, %s1480_s21 }
 0x9f3   :  { %v1407_v54 = vpop.eup %1406 }
 0x9f4   :  { %v818_v53 = vpop.f32.mrf.mxu3  ;;  %v1409_v49 = vpop.eup %1408  ;;  %v837_v52 = vmul.f32 0.5, %v1407_v54 }
 0x9f5   :  { %v836_v55 = vmul.f32 0.5, %v1409_v49 }
 0x9f6   :  { %v845_v56 = vadd.f32 0.5, %v837_v52 }
 0x9f7   :  { %v844_v57 = vadd.f32 0.5, %v836_v55 }
 0x9f8   :  { %v856_v59 = vmul.f32 %v845_v56, %v1927_v8 }
 0x9fc   :  { %v821_v44 = vpop.f32.mrf.mxu3 }
 0x9fd   :  { %1410 = vtanh.f32 %v821_v44 }
 0x9fe   :  { %1412 = vtanh.f32 %v818_v53 }
 0xa03   :  { %v1411_v58 = vpop.eup %1410 }
 0xa04   :  { %v857_v60 = vmul.f32 %v1411_v58, %v844_v57  ;;  %v1413_v61 = vpop.eup %1412 }
 0xa05   :  { %v838_v62 = vmul.f32 0.5, %v1413_v61 }
 0xa06   :  { %v858_v0 = vadd.f32 %v857_v60, %v856_v59 }
 0xa07   :  { %v846_v2 = vadd.f32 0.5, %v838_v62 }
 0xa08   :  { %1414 = vtanh.f32 %v858_v0 }
 0xa0e   :  { %v1415_v5 = vpop.eup %1414 }
 0xa0f   :  { %v860_v18 = vmul.f32 %v1415_v5, %v846_v2 }
 0xa11   :  { %869 = vrot.lane.b32.xlu2 %v860_v18, %s1481_s22  ;;  %875 = vrot.lane.b32.xlu0 %v860_v18, %s1480_s21 }
 0xa19   :  { %867 = vrot.lane.b32.xlu0 %v866_v43, %s1481_s22 }
 0xa64   :  { %v874_v8 = vpop.permute.xlu1 %873 }
 0xa6b   :  { %v870_v24 = vpop.permute.xlu2 %869 }
 0xa83   :  { %v1976_v23 = vpop.permute.xlu0 %875 }
 0xa84   :  { %1185 = vmatpush.msk.msra.mxu0 %vm1236_vm1, %v1976_v23 }
 0xa86   :  { %1187 = vmatpush.msk.msra.mxu0 %vm1236_vm1, %v874_v8 }
 0xa88   :  { %891 = vmatpush.msra.mxu0 %v860_v18 }
 0xa8a   :  { %1189 = vmatpush.msk.msra.mxu0 %vm1188_vm4, %v865_v46 }
 0xa8b   :  { %v868_v26 = vpop.permute.xlu0 %867 }
 0xa8c   :  { %1191 = vmatpush.msk.msra.mxu0 %vm1237_vm2, %v870_v24 }
 0xa8e   :  { %1193 = vmatpush.msk.msra.mxu0 %vm1237_vm2, %v868_v26 }
 0xa8f   :  { %1194 = vmatmul.msk.f32.vlgmr.msra.gmra.mxu0 %vm110_vm3, %v1430_v30 }
 0xa97   :  { %1195 = vmatmul.msk.f32.gmra.mxu0 %vm110_vm3, %v1431_v3 }
 0xa9f   :  { %1196 = vmatmul.msk.f32.gmra.mxu0 %vm110_vm3, %v1432_v11 }
 0xaa7   :  { %1197 = vmatmul.msk.f32.gmra.mxu0 %vm110_vm3, %v1433_v13 }
 0xaaf   :  { %1198 = vmatmul.msk.f32.gmra.mxu0 %vm110_vm3, %v1434_v32 }
 0xab7   :  { %1199 = vmatmul.msk.f32.gmra.mxu0 %vm110_vm3, %v1435_v12 }
 0xabf   :  { %1200 = vmatmul.msk.f32.gmra.mxu0 %vm110_vm3, %v1436_v33 }
 0xac7   :  { %1201 = vmatmul.msk.f32.gmra.mxu0 %vm110_vm3, %v1437_v14 }
 0xb0c   :  { %v896_v34 = vpop.f32.mrf.mxu0 }
 0xb0d   :  { %v1030_v34 = vstv %s1029_s29 }
 0xb14   :  { %v898_v37 = vpop.f32.mrf.mxu0 }
 0xb1c   :  { %v900_v35 = vpop.f32.mrf.mxu0 }
 0xb24   :  { %v902_v39 = vpop.f32.mrf.mxu0 }
 0xb25   :  { %v1034_v39 = vstv %s1235_s30 }
 0xb2c   :  { %v904_v36 = vpop.f32.mrf.mxu0 }
 0xb34   :  { %v907_v40 = vpop.f32.mrf.mxu0 }
 0xb35   :  { %1416 = vtanh.f32 %v907_v40 }
 0xb36   :  { %1418 = vtanh.f32 %v904_v36 }
 0xb3b   :  { %v1417_v42 = vpop.eup %1416 }
 0xb3c   :  { %v910_v38 = vpop.f32.mrf.mxu0  ;;  %v1419_v41 = vpop.eup %1418  ;;  %v921_v45 = vmul.f32 0.5, %v1417_v42 }
 0xb3d   :  { %v920_v48 = vmul.f32 0.5, %v1419_v41 }
 0xb3e   :  { %v925_v50 = vadd.f32 0.5, %v921_v45 }
 0xb3f   :  { %v924_v51 = vadd.f32 0.5, %v920_v48 }
 0xb40   :  { %v932_v43 = vmul.f32 %v925_v50, %v858_v0 }
 0xb44   :  { %v913_v47 = vpop.f32.mrf.mxu0 }
 0xb45   :  { %1420 = vtanh.f32 %v913_v47 }
 0xb46   :  { %1422 = vtanh.f32 %v910_v38 }
 0xb4b   :  { %v1421_v46 = vpop.eup %1420 }
 0xb4c   :  { %v933_v53 = vmul.f32 %v1421_v46, %v924_v51  ;;  %v1423_v54 = vpop.eup %1422 }
 0xb4d   :  { %v922_v52 = vmul.f32 0.5, %v1423_v54 }
 0xb4e   :  { %v934_v49 = vadd.f32 %v933_v53, %v932_v43 }
 0xb4f   :  { %v926_v44 = vadd.f32 0.5, %v922_v52 }
 0xb50   :  { %1424 = vtanh.f32 %v934_v49 }
 0xb56   :  { %v1425_v55 = vpop.eup %1424 }
 0xb57   :  { %v936_v56 = vmul.f32 %v1425_v55, %v926_v44 }
 0xb59   :  { %937 = vrot.lane.b32.xlu2 %v936_v56, %s1481_s22  ;;  %940 = vrot.lane.b32.xlu1 %v936_v56, %s1480_s21 }
 0xb5a   :  { %947 = vmatpush.msrb.mxu1 %v936_v56 }
 0xb5c   :  { %948 = vmatpush.msrb.mxu1 %v860_v18 }
 0xb5e   :  { %949 = vmatpush.msrb.mxu1 %v1930_v25 }
 0xb60   :  { %950 = vmatpush.msrb.mxu1 %v1880_v17 }
 0xb62   :  { %951 = vmatpush.msrb.mxu1 %v1830_v7 }
 0xb64   :  { %952 = vmatpush.msrb.mxu1 %v1780_v9 }
 0xb66   :  { %953 = vmatpush.msrb.mxu1 %v1730_v19 }
 0xb68   :  { %954 = vmatpush.msrb.mxu1 %v1680_v28  ;;  %v39_v28 = vld [vmem:[%s2085_s2] sm:$0xff] }
 0xbb3   :  { %v938_v57 = vpop.permute.xlu2 %937 }
 0xbb4   :  { %1203 = vmatpush.msk.msrb.mxu1 %vm1237_vm2, %v938_v57 }
 0xbb6   :  { %1205 = vmatpush.msk.msrb.mxu1 %vm1237_vm2, %v870_v24 }
 0xbb8   :  { %1207 = vmatpush.msk.msrb.mxu1 %vm1237_vm2, %v1945_v27 }
 0xbba   :  { %1209 = vmatpush.msk.msrb.mxu1 %vm1237_vm2, %v1895_v21  ;;  %v1482_v21 = vmov 1024.0  }
 0xbbb   :  { %1426 = vrcp.f32 %v1482_v21 }
 0xbbc   :  { %1211 = vmatpush.msk.msrb.mxu1 %vm1237_vm2, %v1845_v15 }
 0xbbe   :  { %1213 = vmatpush.msk.msrb.mxu1 %vm1237_vm2, %v1795_v16 }
 0xbc0   :  { %1215 = vmatpush.msk.msrb.mxu1 %vm1237_vm2, %v1745_v22 }
 0xbc1   :  { %v1427_v25 = vpop.eup %1426 }
 0xbc2   :  { %1217 = vmatpush.msk.msrb.mxu1 %vm1237_vm2, %v1695_v31  ;;  %v40_v31 = vld [vmem:[%s2085_s2 + $0x8] sm:$0xff]  ;;  %vm1002_vm6 = vweird.f32 %v1427_v25 }
 0xbc3   :  { %963 = vmatmul.f32.vlgmr.msrb.gmra.mxu1 %v39_v28 }
 0xbcb   :  { %v941_v19 = vpop.permute.xlu1 %940 }
 0xbcc   :  { %1219 = vmatpush.msk.msrb.mxu2 %vm1236_vm1, %v941_v19 }
 0xbce   :  { %1221 = vmatpush.msk.msrb.mxu2 %vm1236_vm1, %v1976_v23 }
 0xbd0   :  { %1223 = vmatpush.msk.msrb.mxu2 %vm1236_vm1, %v1937_v1  ;;  %v998_v1 = vmul.f32 1024.0, %v1427_v25 }
 0xbd2   :  { %1225 = vmatpush.msk.msrb.mxu2 %vm1236_vm1, %v1887_v63  ;;  %v999_v27 = vsub.f32 1.0, %v998_v1 }
 0xbd4   :  { %1227 = vmatpush.msk.msrb.mxu2 %vm1236_vm1, %v1837_v4  ;;  %v1000_v6 = vmul.f32 %v1427_v25, %v999_v27 }
 0xbd6   :  { %1229 = vmatpush.msk.msrb.mxu2 %vm1236_vm1, %v1787_v10 }
 0xbd8   :  { %1231 = vmatpush.msk.msrb.mxu2 %vm1236_vm1, %v1737_v20 }
 0xbda   :  { %1233 = vmatpush.msk.msrb.mxu2 %vm1236_vm1, %v1687_v29  ;;  %v1001_v29 = vadd.f32 %v1427_v25, %v1000_v6 }
 0xbdb   :  { %1234 = vmatmul.msk.f32.vlgmr.msrb.gmra.mxu2 %vm943_vm5, %v40_v31 }
 0xbdc   :  { %v1003_v58 = vsel %vm1002_vm6, %v1427_v25, %v1001_v29 }
 0xc40   :  { %v964_v22 = vpop.f32.mrf.mxu1 }
 0xc5e   :  { %v984_v9 = vpop.f32.mrf.mxu2 }
 0xc5f   :  { %v985_v16 = vadd.f32 %v984_v9, %v964_v22 }
 0xc61   :  { %987 = vadd.xlane.f32.xlu0 %v985_v16 }
 0xcd4   :  { %v988_v7 = vpop.xlane.xlu0 %987 }
 0xcd5   :  { %v989_v10 = vrot.slane %v988_v7, 4 }
 0xcd7   :  { %v990_v4 = vadd.f32 %v989_v10, %v988_v7 }
 0xcd9   :  { %v991_v15 = vrot.slane %v990_v4, 2 }
 0xcdb   :  { %v992_v17 = vadd.f32 %v991_v15, %v990_v4 }
 0xcdd   :  { %v993_v20 = vrot.slane %v992_v17, 1 }
 0xcdf   :  { %v994_v63 = vadd.f32 %v993_v20, %v992_v17 }
 0xce1   :  { %1256 = vpush %v994_v63 }
 0xd12   :  { %s1257_s2 = spop %1256 }
 0xd13   :  { %v996_v59 = vstv %s1257_s2 }
 0xd14   :  { %v1004_v60 = vmul.f32 %v1003_v58, %v996_v59 }
 0xd16   :  { %v1005_v61 = vsub.f32 %v985_v16, %v1004_v60 }
 0xd18   :  { %v1006_v0 = vmul.f32 %v1005_v61, %v1005_v61 }
 0xd1a   :  { %1007 = vadd.xlane.f32.xlu1 %v1006_v0 }
 0xd8d   :  { %v1008_v62 = vpop.xlane.xlu1 %1007 }
 0xd8e   :  { %v1009_v2 = vrot.slane %v1008_v62, 4 }
 0xd90   :  { %v1010_v5 = vadd.f32 %v1009_v2, %v1008_v62 }
 0xd92   :  { %v1011_v18 = vrot.slane %v1010_v5, 2 }
 0xd94   :  { %v1012_v23 = vadd.f32 %v1011_v18, %v1010_v5 }
 0xd96   :  { %v1013_v8 = vrot.slane %v1012_v23, 1 }
 0xd98   :  { %v1014_v24 = vadd.f32 %v1013_v8, %v1012_v23 }
 0xd9a   :  { %1258 = vpush %v1014_v24 }
 0xdcb   :  { %s1259_s28 = spop %1258 }
 0xdcc   :  { %v1016_v26 = vstv %s1259_s28 }
 0xdcd   :  { %v1017_v30 = vmul.f32 %v1016_v26, %v1003_v58 }
 0xdcf   :  { %v1018_v3 = vadd.f32 1e-05, %v1017_v30 }
 0xdd1   :  { %1428 = vrsqrt.f32 %v1018_v3  ;;  %vm1025_vm8 = vweird.f32 %v1018_v3 }
 0xdd7   :  { %v1429_v11 = vpop.eup %1428 }
 0xdd8   :  { %v1020_v13 = vmul.f32 %v1429_v11, %v1018_v3  ;;  %vm1026_vm7 = vweird.f32 %v1429_v11 }
 0xdd9   :  { %vm1027_vm9 = vmor %vm1025_vm8, %vm1026_vm7 }
 0xdda   :  { %v1021_v32 = vmul.f32 %v1429_v11, %v1020_v13 }
 0xddc   :  { %v1022_v12 = vmul.f32 0.5, %v1021_v32 }
 0xdde   :  { %v1023_v33 = vsub.f32 1.5, %v1022_v12 }
 0xde0   :  { %v1024_v14 = vmul.f32 %v1429_v11, %v1023_v33 }
 0xde2   :  { %v1028_v37 = vsel %vm1027_vm9, %v1429_v11, %v1024_v14 }
 0xde3   :  { %v1031_v35 = vmul.f32 %v1030_v34, %v1028_v37 }
 0xde5   :  { %v1032_v36 = vmul.f32 %v1031_v35, %v1005_v61 }
 0xde7   :  { %v1035_v40 = vadd.f32 %v1034_v39, %v1032_v36 }
 0xde9   :  { %v1036_v38 = vmax.f32 %v1035_v40, 0.0 }
 0xdeb   :  { %1037 = vst [vmem:[#allocation5] sm:$0xff] %v1036_v38 }
 0xdec   :  { %1048 = dma.vmem_to_hbm [thread:$0]  %s1044_s6, 128, %s1046_s9, [#allocation3]  }
 0xded   :  { %1476 = dma.done.wait [#allocation3], 128  }
 0xdee   :  { %1477 = vsyncadd [#allocation3], 4294967168 }
 0xdef   :  { %1053 = vsyncpa [#allocation3], 1 }
 0xdf0   :  { %1054 = vsyncpa [#allocation4], 1 }

</bundles_post_ra>
